<compile_context>
chip_gen: v6e
topology: v6e:2x2x1
jax: 0.10.0
libtpu: 0.0.40
codegen_flags: <defaults>
</compile_context>

<pallas_src>
import math

import numpy as np

import jax
import jax.numpy as jnp
from jax.experimental import pallas as pl
from jax.experimental.pallas import tpu as pltpu


# ---------------------------------------------------------------------------
# Parameter prep: BN folding + row-Toeplitz weight construction (wrapper side)
# ---------------------------------------------------------------------------
def fold_bn(gamma, beta, mean, var, eps=1e-5):
    scale = gamma / jnp.sqrt(var + eps)
    bias = beta - mean * scale
    return scale, bias                                    # (C,), (C,)


def conv3x3_row_toeplitz(w_oihw, scale, w_in, stride):
    """3x3 conv (pad=1) + folded BN scale -> (3, w_in*Cin, Wo*Cout) Toeplitz."""
    cout, cin, kh, kw = w_oihw.shape
    wo_n = (w_in - 1) // stride + 1
    s = np.zeros((kw, w_in, wo_n), np.float32)
    for kj in range(kw):
        for wo in range(wo_n):
            win = stride * wo + kj - 1
            if 0 <= win < w_in:
                s[kj, win, wo] = 1.0
    wf = w_oihw * scale[:, None, None, None]               # fold BN scale
    t = jnp.einsum("bvu,ocab->avcuo", jnp.asarray(s), wf)  # (kh, w_in, cin, wo, cout)
    return t.reshape(kh, w_in * cin, wo_n * cout)


def conv1x1_row_toeplitz(w_oihw, scale, w_in, stride):
    """1x1 conv (pad=0, stride) + folded BN scale -> (w_in*Cin, Wo*Cout)."""
    cout, cin = w_oihw.shape[:2]
    wo_n = (w_in - 1) // stride + 1
    s = np.zeros((w_in, wo_n), np.float32)
    for wo in range(wo_n):
        s[stride * wo, wo] = 1.0
    wf = w_oihw[:, :, 0, 0] * scale[:, None]
    t = jnp.einsum("vu,oc->vcuo", jnp.asarray(s), wf)       # (w_in, cin, wo, cout)
    return t.reshape(w_in * cin, wo_n * cout)


def _lane_pad_channels(c, w_spatial):
    """Smallest c' >= c with (w_spatial * c') % 128 == 0 (lane-dense rows)."""
    step = 128 // math.gcd(int(w_spatial), 128)
    return ((int(c) + step - 1) // step) * step


def _pad_dim(a, axis, new_size):
    pad = [(0, 0)] * a.ndim
    pad[axis] = (0, int(new_size) - a.shape[axis])
    return jnp.pad(a, pad)


def _weight_spec(shape, single_buffer):
    """Resident operand: constant index map, optionally single-buffered."""
    index_map = lambda b, _n=len(shape): (0,) * _n
    if single_buffer:
        return pl.BlockSpec(shape, index_map, pipeline_mode=pl.Buffered(1))
    return pl.BlockSpec(shape, index_map)


def _choose_batch_tile(n, ho, per_image_bytes, resident_bytes,
                       budget_bytes=48 << 20, target_rows=512):
    """Largest divisor of n with bt*ho <= target_rows that fits the budget."""
    best = 1
    for b in range(1, n + 1):
        if n % b:
            continue
        if b > 1 and b * ho > target_rows:
            continue
        if b > 1 and resident_bytes + b * per_image_bytes > budget_bytes:
            continue
        best = b
    return best


# ---------------------------------------------------------------------------
# Fused BasicBlock kernel
# ---------------------------------------------------------------------------
def _make_block_kernel(*, stride, bt, ho, n1, n2, has_sc):
    """conv1+bn1+relu -> conv2+bn2 -> (+shortcut) -> relu, all in VMEM."""

    def kernel(*refs):
        if stride == 1:
            x_ref = refs[0]
            i = 1
        else:
            xe_ref, xo_ref = refs[0], refs[1]
            i = 2
        t1_ref, b1_ref, t2_ref, b2_ref = refs[i:i + 4]
        i += 4
        if has_sc:
            tsc_ref, bsc_ref = refs[i:i + 2]
            i += 2
        o_ref, p_ref = refs[i], refs[i + 1]

        def mm(lhs3, w):
            # (bt, ho, K) x (K, N) -> (bt*ho, N) f32 accumulation on the MXU.
            return jnp.dot(lhs3.reshape(bt * ho, lhs3.shape[-1]), w,
                           preferred_element_type=jnp.float32)

        if stride == 1:
            def xin(ki):
                return x_ref[:, ki:ki + ho, :]
            x_sc = x_ref[:, 1:1 + ho, :]
        else:
            # even/odd-row planes (pre-split wrapper side; no strided loads).
            def xin(ki):
                if ki == 0:
                    return xe_ref[:, 0:ho, :]
                if ki == 1:
                    return xo_ref[:, 0:ho, :]
                return xe_ref[:, 1:1 + ho, :]
            x_sc = xo_ref[:, 0:ho, :]

        # conv1 (3x3, stride, pad=1) + bn1 + relu: 3 row-shifted Toeplitz matmuls.
        acc = mm(xin(0), t1_ref[0])
        acc = acc + mm(xin(1), t1_ref[1])
        acc = acc + mm(xin(2), t1_ref[2])
        out1 = jnp.maximum(acc + b1_ref[...], 0.0)

        # Intermediate stays in VMEM; only the 2 halo rows are zeroed.
        p_ref[:, 0:1, :] = jnp.zeros((bt, 1, n1), p_ref.dtype)
        p_ref[:, ho + 1:ho + 2, :] = jnp.zeros((bt, 1, n1), p_ref.dtype)
        p_ref[:, 1:ho + 1, :] = out1.reshape(bt, ho, n1).astype(p_ref.dtype)

        # conv2 (3x3, stride=1, pad=1) + bn2.
        acc2 = mm(p_ref[:, 0:ho, :], t2_ref[0])
        acc2 = acc2 + mm(p_ref[:, 1:ho + 1, :], t2_ref[1])
        acc2 = acc2 + mm(p_ref[:, 2:ho + 2, :], t2_ref[2])
        acc2 = acc2 + b2_ref[...]

        # Shortcut (+ final ReLU).
        if has_sc:
            sc = mm(x_sc, tsc_ref[...]) + bsc_ref[...]
        else:
            # identity: stride==1, Cin==Cout, identical planar-row layout.
            sc = x_sc.reshape(bt * ho, n2).astype(jnp.float32)

        o_ref[...] = jnp.maximum(acc2 + sc, 0.0).reshape(bt, ho, n2).astype(o_ref.dtype)

    return kernel


def basic_block_forward(x_nchw, params, stride, *, use_bf16=False,
                        vmem_budget_bytes=48 << 20, target_rows=512):
    """BasicBlock forward.  Accepts / returns PyTorch-style NCHW float32."""
    assert stride in (1, 2), "only stride 1 or 2 supported"
    N, Cin, H, W = map(int, x_nchw.shape)
    w1, w2 = params["w1"], params["w2"]
    Cmid, Cout = int(w1.shape[0]), int(w2.shape[0])
    has_sc = params["wsc"] is not None
    Ho = (H - 1) // stride + 1
    Wo = (W - 1) // stride + 1
    cdt = jnp.bfloat16 if use_bf16 else jnp.float32
    isz = jnp.dtype(cdt).itemsize

    # Lane-density channel padding: last dims become multiples of 128.
    Cin_p = _lane_pad_channels(Cin, W)
    Cmid_p = _lane_pad_channels(Cmid, Wo)
    Cout_p = _lane_pad_channels(Cout, Wo)
    if not has_sc:
        assert stride == 1 and Cin == Cout and Cin_p == Cout_p
    n_in, n1, n2 = W * Cin_p, Wo * Cmid_p, Wo * Cout_p

    # Fold BN scale into conv weights (zero-padded channels), build Toeplitz.
    s1, b1 = fold_bn(*params["bn1"])
    s2, b2 = fold_bn(*params["bn2"])
    w1p = _pad_dim(_pad_dim(w1, 0, Cmid_p), 1, Cin_p)
    w2p = _pad_dim(_pad_dim(w2, 0, Cout_p), 1, Cmid_p)
    t1 = conv3x3_row_toeplitz(w1p, _pad_dim(s1, 0, Cmid_p), W, stride).astype(cdt)
    t2 = conv3x3_row_toeplitz(w2p, _pad_dim(s2, 0, Cout_p), Wo, 1).astype(cdt)
    b1_row = jnp.tile(_pad_dim(b1, 0, Cmid_p), Wo)[None, :].astype(jnp.float32)
    b2_row = jnp.tile(_pad_dim(b2, 0, Cout_p), Wo)[None, :].astype(jnp.float32)

    # NCHW -> H-zero-padded, channel-padded planar rows (N, H+2, W*Cin_p).
    x = jnp.transpose(x_nchw, (0, 2, 3, 1)).astype(jnp.float32)      # NHWC
    x = jnp.pad(x, ((0, 0), (1, 1), (0, 0), (0, Cin_p - Cin)))
    x_rows = x.reshape(N, H + 2, n_in).astype(cdt)

    if stride == 1:
        x_args = [x_rows]
        x_shapes = [(H + 2, n_in)]
    else:
        xe = x_rows[:, 0::2, :]              # even padded rows
        xo = x_rows[:, 1::2, :]              # odd padded rows
        x_args = [xe, xo]
        x_shapes = [(int(xe.shape[1]), n_in), (int(xo.shape[1]), n_in)]

    args = list(x_args) + [t1, b1_row, t2, b2_row]
    w_shapes = [(3, n_in, n1), (1, n1), (3, n1, n2), (1, n2)]
    if has_sc:
        ssc, bsc = fold_bn(*params["bnsc"])
        wscp = _pad_dim(_pad_dim(params["wsc"], 0, Cout_p), 1, Cin_p)
        tsc = conv1x1_row_toeplitz(wscp, _pad_dim(ssc, 0, Cout_p), W, stride).astype(cdt)
        bsc_row = jnp.tile(_pad_dim(bsc, 0, Cout_p), Wo)[None, :].astype(jnp.float32)
        args += [tsc, bsc_row]
        w_shapes += [(n_in, n2), (1, n2)]

    # Choose images per grid step: M = bt*Ho fills the MXU, VMEM stays under
    # a budget sized for v7x's 64 MiB physical VMEM.
    rows_in = sum(s[0] for s in x_shapes)
    per_image = (2 * rows_in * n_in * isz           # double-buffered input
                 + 2 * Ho * n2 * 4                  # double-buffered f32 output
                 + (Ho + 2) * n1 * isz)             # VMEM intermediate scratch
    resident = 2 * sum(int(np.prod(s)) for s in w_shapes) * 4   # conservative
    bt = _choose_batch_tile(N, Ho, per_image, resident,
                            budget_bytes=vmem_budget_bytes, target_rows=target_rows)
    vmem_limit = int(min(64 << 20, max(32 << 20, (resident + bt * per_image) * 3 // 2)))

    kernel = _make_block_kernel(stride=stride, bt=bt, ho=Ho, n1=n1, n2=n2,
                                has_sc=has_sc)

    def _call(single_buffer_weights):
        x_specs = [pl.BlockSpec((bt,) + s, lambda b: (b, 0, 0)) for s in x_shapes]
        w_specs = [_weight_spec(s, single_buffer_weights) for s in w_shapes]
        return pl.pallas_call(
            kernel,
            out_shape=jax.ShapeDtypeStruct((N, Ho, n2), jnp.float32),
            grid_spec=pltpu.PrefetchScalarGridSpec(
                num_scalar_prefetch=0,
                grid=(N // bt,),
                in_specs=x_specs + w_specs,
                out_specs=pl.BlockSpec((bt, Ho, n2), lambda b: (b, 0, 0)),
                scratch_shapes=[pltpu.VMEM((bt, Ho + 2, n1), cdt)],
            ),
            compiler_params=pltpu.CompilerParams(
                dimension_semantics=("parallel",),
                vmem_limit_bytes=vmem_limit),
        )(*args)

    try:
        out = _call(True)       # single-buffered resident weights
    except Exception:           # pragma: no cover - portability fallback
        out = _call(False)      # default double-buffering

    out = out.reshape(N, Ho, Wo, Cout_p)[:, :, :, :Cout]
    return jnp.transpose(out, (0, 3, 1, 2))                          # back to NCHW


# ---------------------------------------------------------------------------
# Pure-JAX reference (lax.conv) for the correctness check
# ---------------------------------------------------------------------------
def basic_block_reference(x, params, stride, eps=1e-5):
    def conv(x, w, s, pad):
        return jax.lax.conv_general_dilated(
            x, w, (s, s), [(pad, pad), (pad, pad)],
            dimension_numbers=("NCHW", "OIHW", "NCHW"))

    def bn(x, stats):
        gamma, beta, mean, var = stats
        inv = gamma / jnp.sqrt(var + eps)
        return x * inv[None, :, None, None] + (beta - mean * inv)[None, :, None, None]

    out = jax.nn.relu(bn(conv(x, params["w1"], stride, 1), params["bn1"]))
    out = bn(conv(out, params["w2"], 1, 1), params["bn2"])
    if params["wsc"] is not None:
        sc = bn(conv(x, params["wsc"], stride, 0), params["bnsc"])
    else:
        sc = x
    return jax.nn.relu(out + sc)


# ---------------------------------------------------------------------------
# Deterministic parameter construction
# ---------------------------------------------------------------------------
def make_params(key, inplanes, planes, honey, index, stride):
    middle = int(planes * honey[index] / 10)
    ks = jax.random.split(key, 16)

    def bn_stats(k, c):
        k1, k2, k3, k4 = jax.random.split(k, 4)
        gamma = jax.random.uniform(k1, (c,), jnp.float32, 0.5, 1.5)
        beta = 0.1 * jax.random.normal(k2, (c,), jnp.float32)
        mean = 0.1 * jax.random.normal(k3, (c,), jnp.float32)
        var = jax.random.uniform(k4, (c,), jnp.float32, 0.5, 1.5)
        return (gamma, beta, mean, var)

    params = {
        "w1": 0.2 * jax.random.normal(ks[0], (middle, inplanes, 3, 3), jnp.float32),
        "bn1": bn_stats(ks[1], middle),
        "w2": 0.2 * jax.random.normal(ks[2], (planes, middle, 3, 3), jnp.float32),
        "bn2": bn_stats(ks[3], planes),
    }
    if stride != 1 or inplanes != planes:
        params["wsc"] = 0.2 * jax.random.normal(ks[4], (planes, inplanes, 1, 1), jnp.float32)
        params["bnsc"] = bn_stats(ks[5], planes)
    else:
        params["wsc"] = None
        params["bnsc"] = None
    return params


# ---------------------------------------------------------------------------
if __name__ == "__main__":
    key = jax.random.PRNGKey(0)

    def run_case(k, n, inplanes, planes, honey, index, stride, hw):
        kx, kp = jax.random.split(k)
        x = jax.random.normal(kx, (n, inplanes, hw, hw), jnp.float32)   # NCHW
        params = make_params(kp, inplanes, planes, honey, index, stride)
        out = jax.block_until_ready(basic_block_forward(x, params, stride))
        ref = jax.block_until_ready(basic_block_reference(x, params, stride))
        ho = (hw - 1) // stride + 1
        assert out.shape == (n, planes, ho, ho), out.shape
        err = float(jnp.max(jnp.abs(out - ref)))
        assert jnp.allclose(out, ref, atol=1e-4, rtol=1e-4), err

    k1, k2, k3 = jax.random.split(key, 3)
    # BasicBlock(inplanes=4, planes=8, honey=[5], index=0, stride=1):
    # middle=4, 1x1-conv shortcut.
    run_case(k1, 2, 4, 8, [5], 0, 1, 16)
    # Identity-shortcut block (stride=1, inplanes == planes).
    run_case(k2, 2, 8, 8, [10], 0, 1, 16)
    # Downsampling block (stride=2, 1x1-conv shortcut).
    run_case(k3, 2, 8, 16, [10], 0, 2, 16)

    print("KERNEL_OK")
</pallas_src>

<mosaic_0001>
module attributes {stable_mosaic.version = 11 : i64} {
  func.func @kernel(%arg0: i32, %arg1: memref<2x18x128xf32, #tpu.memory_space<vmem>>, %arg2: memref<3x128x128xf32, #tpu.memory_space<vmem>>, %arg3: memref<1x128xf32, #tpu.memory_space<vmem>>, %arg4: memref<3x128x128xf32, #tpu.memory_space<vmem>>, %arg5: memref<1x128xf32, #tpu.memory_space<vmem>>, %arg6: memref<128x128xf32, #tpu.memory_space<vmem>>, %arg7: memref<1x128xf32, #tpu.memory_space<vmem>>, %arg8: memref<2x16x128xf32, #tpu.memory_space<vmem>>, %arg9: memref<2x18x128xf32, #tpu.memory_space<vmem>>) attributes {dimension_semantics = [#tpu.dimension_semantics<parallel>], iteration_bounds = array<i64: 1>, scalar_prefetch = 0 : i64, scratch_operands = 1 : i64, tpu.core_type = #tpu.core_type<tc>, window_params = [{transform_indices = @transform_0, window_bounds = array<i64: 2, 18, 128>}, {pipeline_mode = #tpu.pipeline_mode<synchronous>, transform_indices = @transform_1, window_bounds = array<i64: 3, 128, 128>}, {pipeline_mode = #tpu.pipeline_mode<synchronous>, transform_indices = @transform_2, window_bounds = array<i64: 1, 128>}, {pipeline_mode = #tpu.pipeline_mode<synchronous>, transform_indices = @transform_3, window_bounds = array<i64: 3, 128, 128>}, {pipeline_mode = #tpu.pipeline_mode<synchronous>, transform_indices = @transform_4, window_bounds = array<i64: 1, 128>}, {pipeline_mode = #tpu.pipeline_mode<synchronous>, transform_indices = @transform_5, window_bounds = array<i64: 128, 128>}, {pipeline_mode = #tpu.pipeline_mode<synchronous>, transform_indices = @transform_6, window_bounds = array<i64: 1, 128>}, {transform_indices = @transform_7, window_bounds = array<i64: 2, 16, 128>}]} {
    %c0 = arith.constant 0 : index
    %c1 = arith.constant 1 : index
    %c0_0 = arith.constant 0 : index
    %0 = vector.load %arg1[%c0, %c1, %c0_0] : memref<2x18x128xf32, #tpu.memory_space<vmem>>, vector<2x16x128xf32>
    %c0_1 = arith.constant 0 : index
    %c0_2 = arith.constant 0 : index
    %c0_3 = arith.constant 0 : index
    %1 = vector.load %arg1[%c0_1, %c0_2, %c0_3] : memref<2x18x128xf32, #tpu.memory_space<vmem>>, vector<2x16x128xf32>
    %c0_4 = arith.constant 0 : index
    %c0_5 = arith.constant 0 : index
    %c0_6 = arith.constant 0 : index
    %2 = vector.load %arg2[%c0_4, %c0_5, %c0_6] : memref<3x128x128xf32, #tpu.memory_space<vmem>>, vector<1x128x128xf32>
    %3 = vector.shape_cast %2 : vector<1x128x128xf32> to vector<128x128xf32>
    %4 = vector.shape_cast %1 : vector<2x16x128xf32> to vector<32x128xf32>
    %cst = arith.constant dense<0.000000e+00> : vector<32x128xf32>
    %5 = tpu.matmul %4, %3, %cst {dimension_numbers = #tpu.dot_dimension_numbers<[1], [0], [0], [1], [0, 0, 1, 1], [], []>} : vector<32x128xf32>, vector<128x128xf32>, vector<32x128xf32> -> vector<32x128xf32>
    %c0_7 = arith.constant 0 : index
    %c1_8 = arith.constant 1 : index
    %c0_9 = arith.constant 0 : index
    %6 = vector.load %arg1[%c0_7, %c1_8, %c0_9] : memref<2x18x128xf32, #tpu.memory_space<vmem>>, vector<2x16x128xf32>
    %c1_10 = arith.constant 1 : index
    %c0_11 = arith.constant 0 : index
    %c0_12 = arith.constant 0 : index
    %7 = vector.load %arg2[%c1_10, %c0_11, %c0_12] : memref<3x128x128xf32, #tpu.memory_space<vmem>>, vector<1x128x128xf32>
    %8 = vector.shape_cast %7 : vector<1x128x128xf32> to vector<128x128xf32>
    %9 = vector.shape_cast %6 : vector<2x16x128xf32> to vector<32x128xf32>
    %cst_13 = arith.constant dense<0.000000e+00> : vector<32x128xf32>
    %10 = tpu.matmul %9, %8, %cst_13 {dimension_numbers = #tpu.dot_dimension_numbers<[1], [0], [0], [1], [0, 0, 1, 1], [], []>} : vector<32x128xf32>, vector<128x128xf32>, vector<32x128xf32> -> vector<32x128xf32>
    %11 = arith.addf %5, %10 : vector<32x128xf32>
    %c0_14 = arith.constant 0 : index
    %c2 = arith.constant 2 : index
    %c0_15 = arith.constant 0 : index
    %12 = vector.load %arg1[%c0_14, %c2, %c0_15] : memref<2x18x128xf32, #tpu.memory_space<vmem>>, vector<2x16x128xf32>
    %c2_16 = arith.constant 2 : index
    %c0_17 = arith.constant 0 : index
    %c0_18 = arith.constant 0 : index
    %13 = vector.load %arg2[%c2_16, %c0_17, %c0_18] : memref<3x128x128xf32, #tpu.memory_space<vmem>>, vector<1x128x128xf32>
    %14 = vector.shape_cast %13 : vector<1x128x128xf32> to vector<128x128xf32>
    %15 = vector.shape_cast %12 : vector<2x16x128xf32> to vector<32x128xf32>
    %cst_19 = arith.constant dense<0.000000e+00> : vector<32x128xf32>
    %16 = tpu.matmul %15, %14, %cst_19 {dimension_numbers = #tpu.dot_dimension_numbers<[1], [0], [0], [1], [0, 0, 1, 1], [], []>} : vector<32x128xf32>, vector<128x128xf32>, vector<32x128xf32> -> vector<32x128xf32>
    %17 = arith.addf %11, %16 : vector<32x128xf32>
    %c0_20 = arith.constant 0 : index
    %c0_21 = arith.constant 0 : index
    %18 = vector.load %arg3[%c0_20, %c0_21] : memref<1x128xf32, #tpu.memory_space<vmem>>, vector<1x128xf32>
    %19 = vector.broadcast %18 : vector<1x128xf32> to vector<32x128xf32>
    %20 = arith.addf %17, %19 : vector<32x128xf32>
    %cst_22 = arith.constant 0.000000e+00 : f32
    %21 = vector.broadcast %cst_22 : f32 to vector<32x128xf32>
    %22 = arith.maximumf %20, %21 : vector<32x128xf32>
    %cst_23 = arith.constant 0.000000e+00 : f32
    %23 = vector.broadcast %cst_23 : f32 to vector<2x1x128xf32>
    %c0_24 = arith.constant 0 : index
    %c0_25 = arith.constant 0 : index
    %c0_26 = arith.constant 0 : index
    %24 = vector.load %arg9[%c0_24, %c0_25, %c0_26] : memref<2x18x128xf32, #tpu.memory_space<vmem>>, vector<2x1x128xf32>
    tpu.vector_store %arg9[%c0_24, %c0_25, %c0_26], %23 {strides = array<i32>} : memref<2x18x128xf32, #tpu.memory_space<vmem>>, vector<2x1x128xf32>,
    %cst_27 = arith.constant 0.000000e+00 : f32
    %25 = vector.broadcast %cst_27 : f32 to vector<2x1x128xf32>
    %c0_28 = arith.constant 0 : index
    %c17 = arith.constant 17 : index
    %c0_29 = arith.constant 0 : index
    %26 = vector.load %arg9[%c0_28, %c17, %c0_29] : memref<2x18x128xf32, #tpu.memory_space<vmem>>, vector<2x1x128xf32>
    tpu.vector_store %arg9[%c0_28, %c17, %c0_29], %25 {strides = array<i32>} : memref<2x18x128xf32, #tpu.memory_space<vmem>>, vector<2x1x128xf32>,
    %27 = vector.shape_cast %22 : vector<32x128xf32> to vector<2x16x128xf32>
    %c0_30 = arith.constant 0 : index
    %c1_31 = arith.constant 1 : index
    %c0_32 = arith.constant 0 : index
    %28 = vector.load %arg9[%c0_30, %c1_31, %c0_32] : memref<2x18x128xf32, #tpu.memory_space<vmem>>, vector<2x16x128xf32>
    tpu.vector_store %arg9[%c0_30, %c1_31, %c0_32], %27 {strides = array<i32>} : memref<2x18x128xf32, #tpu.memory_space<vmem>>, vector<2x16x128xf32>,
    %c0_33 = arith.constant 0 : index
    %c0_34 = arith.constant 0 : index
    %c0_35 = arith.constant 0 : index
    %29 = vector.load %arg9[%c0_33, %c0_34, %c0_35] : memref<2x18x128xf32, #tpu.memory_space<vmem>>, vector<2x16x128xf32>
    %c0_36 = arith.constant 0 : index
    %c0_37 = arith.constant 0 : index
    %c0_38 = arith.constant 0 : index
    %30 = vector.load %arg4[%c0_36, %c0_37, %c0_38] : memref<3x128x128xf32, #tpu.memory_space<vmem>>, vector<1x128x128xf32>
    %31 = vector.shape_cast %30 : vector<1x128x128xf32> to vector<128x128xf32>
    %32 = vector.shape_cast %29 : vector<2x16x128xf32> to vector<32x128xf32>
    %cst_39 = arith.constant dense<0.000000e+00> : vector<32x128xf32>
    %33 = tpu.matmul %32, %31, %cst_39 {dimension_numbers = #tpu.dot_dimension_numbers<[1], [0], [0], [1], [0, 0, 1, 1], [], []>} : vector<32x128xf32>, vector<128x128xf32>, vector<32x128xf32> -> vector<32x128xf32>
    %c0_40 = arith.constant 0 : index
    %c1_41 = arith.constant 1 : index
    %c0_42 = arith.constant 0 : index
    %34 = vector.load %arg9[%c0_40, %c1_41, %c0_42] : memref<2x18x128xf32, #tpu.memory_space<vmem>>, vector<2x16x128xf32>
    %c1_43 = arith.constant 1 : index
    %c0_44 = arith.constant 0 : index
    %c0_45 = arith.constant 0 : index
    %35 = vector.load %arg4[%c1_43, %c0_44, %c0_45] : memref<3x128x128xf32, #tpu.memory_space<vmem>>, vector<1x128x128xf32>
    %36 = vector.shape_cast %35 : vector<1x128x128xf32> to vector<128x128xf32>
    %37 = vector.shape_cast %34 : vector<2x16x128xf32> to vector<32x128xf32>
    %cst_46 = arith.constant dense<0.000000e+00> : vector<32x128xf32>
    %38 = tpu.matmul %37, %36, %cst_46 {dimension_numbers = #tpu.dot_dimension_numbers<[1], [0], [0], [1], [0, 0, 1, 1], [], []>} : vector<32x128xf32>, vector<128x128xf32>, vector<32x128xf32> -> vector<32x128xf32>
    %39 = arith.addf %33, %38 : vector<32x128xf32>
    %c0_47 = arith.constant 0 : index
    %c2_48 = arith.constant 2 : index
    %c0_49 = arith.constant 0 : index
    %40 = vector.load %arg9[%c0_47, %c2_48, %c0_49] : memref<2x18x128xf32, #tpu.memory_space<vmem>>, vector<2x16x128xf32>
    %c2_50 = arith.constant 2 : index
    %c0_51 = arith.constant 0 : index
    %c0_52 = arith.constant 0 : index
    %41 = vector.load %arg4[%c2_50, %c0_51, %c0_52] : memref<3x128x128xf32, #tpu.memory_space<vmem>>, vector<1x128x128xf32>
    %42 = vector.shape_cast %41 : vector<1x128x128xf32> to vector<128x128xf32>
    %43 = vector.shape_cast %40 : vector<2x16x128xf32> to vector<32x128xf32>
    %cst_53 = arith.constant dense<0.000000e+00> : vector<32x128xf32>
    %44 = tpu.matmul %43, %42, %cst_53 {dimension_numbers = #tpu.dot_dimension_numbers<[1], [0], [0], [1], [0, 0, 1, 1], [], []>} : vector<32x128xf32>, vector<128x128xf32>, vector<32x128xf32> -> vector<32x128xf32>
    %45 = arith.addf %39, %44 : vector<32x128xf32>
    %c0_54 = arith.constant 0 : index
    %c0_55 = arith.constant 0 : index
    %46 = vector.load %arg5[%c0_54, %c0_55] : memref<1x128xf32, #tpu.memory_space<vmem>>, vector<1x128xf32>
    %47 = vector.broadcast %46 : vector<1x128xf32> to vector<32x128xf32>
    %48 = arith.addf %45, %47 : vector<32x128xf32>
    %c0_56 = arith.constant 0 : index
    %c0_57 = arith.constant 0 : index
    %49 = vector.load %arg6[%c0_56, %c0_57] : memref<128x128xf32, #tpu.memory_space<vmem>>, vector<128x128xf32>
    %50 = vector.shape_cast %0 : vector<2x16x128xf32> to vector<32x128xf32>
    %cst_58 = arith.constant dense<0.000000e+00> : vector<32x128xf32>
    %51 = tpu.matmul %50, %49, %cst_58 {dimension_numbers = #tpu.dot_dimension_numbers<[1], [0], [0], [1], [0, 0, 1, 1], [], []>} : vector<32x128xf32>, vector<128x128xf32>, vector<32x128xf32> -> vector<32x128xf32>
    %c0_59 = arith.constant 0 : index
    %c0_60 = arith.constant 0 : index
    %52 = vector.load %arg7[%c0_59, %c0_60] : memref<1x128xf32, #tpu.memory_space<vmem>>, vector<1x128xf32>
    %53 = vector.broadcast %52 : vector<1x128xf32> to vector<32x128xf32>
    %54 = arith.addf %51, %53 : vector<32x128xf32>
    %55 = arith.addf %48, %54 : vector<32x128xf32>
    %cst_61 = arith.constant 0.000000e+00 : f32
    %56 = vector.broadcast %cst_61 : f32 to vector<32x128xf32>
    %57 = arith.maximumf %55, %56 : vector<32x128xf32>
    %58 = vector.shape_cast %57 : vector<32x128xf32> to vector<2x16x128xf32>
    %c0_62 = arith.constant 0 : index
    %c0_63 = arith.constant 0 : index
    %c0_64 = arith.constant 0 : index
    %59 = vector.load %arg8[%c0_62, %c0_63, %c0_64] : memref<2x16x128xf32, #tpu.memory_space<vmem>>, vector<2x16x128xf32>
    tpu.vector_store %arg8[%c0_62, %c0_63, %c0_64], %58 {strides = array<i32>} : memref<2x16x128xf32, #tpu.memory_space<vmem>>, vector<2x16x128xf32>,
    return
  }
  func.func @transform_0(%arg0: i32) -> (i32, i32, i32) {
    %c0_i32 = arith.constant 0 : i32
    %c0_i32_0 = arith.constant 0 : i32
    %c0_i32_1 = arith.constant 0 : i32
    return %arg0, %c0_i32, %c0_i32_0 : i32, i32, i32
  }
  func.func @transform_1(%arg0: i32) -> (i32, i32, i32) {
    %c0_i32 = arith.constant 0 : i32
    %c0_i32_0 = arith.constant 0 : i32
    %c0_i32_1 = arith.constant 0 : i32
    %c0_i32_2 = arith.constant 0 : i32
    return %c0_i32, %c0_i32_0, %c0_i32_1 : i32, i32, i32
  }
  func.func @transform_2(%arg0: i32) -> (i32, i32) {
    %c0_i32 = arith.constant 0 : i32
    %c0_i32_0 = arith.constant 0 : i32
    %c0_i32_1 = arith.constant 0 : i32
    return %c0_i32, %c0_i32_0 : i32, i32
  }
  func.func @transform_3(%arg0: i32) -> (i32, i32, i32) {
    %c0_i32 = arith.constant 0 : i32
    %c0_i32_0 = arith.constant 0 : i32
    %c0_i32_1 = arith.constant 0 : i32
    %c0_i32_2 = arith.constant 0 : i32
    return %c0_i32, %c0_i32_0, %c0_i32_1 : i32, i32, i32
  }
  func.func @transform_4(%arg0: i32) -> (i32, i32) {
    %c0_i32 = arith.constant 0 : i32
    %c0_i32_0 = arith.constant 0 : i32
    %c0_i32_1 = arith.constant 0 : i32
    return %c0_i32, %c0_i32_0 : i32, i32
  }
  func.func @transform_5(%arg0: i32) -> (i32, i32) {
    %c0_i32 = arith.constant 0 : i32
    %c0_i32_0 = arith.constant 0 : i32
    %c0_i32_1 = arith.constant 0 : i32
    return %c0_i32, %c0_i32_0 : i32, i32
  }
  func.func @transform_6(%arg0: i32) -> (i32, i32) {
    %c0_i32 = arith.constant 0 : i32
    %c0_i32_0 = arith.constant 0 : i32
    %c0_i32_1 = arith.constant 0 : i32
    return %c0_i32, %c0_i32_0 : i32, i32
  }
  func.func @transform_7(%arg0: i32) -> (i32, i32, i32) {
    %c0_i32 = arith.constant 0 : i32
    %c0_i32_0 = arith.constant 0 : i32
    %c0_i32_1 = arith.constant 0 : i32
    return %arg0, %c0_i32, %c0_i32_0 : i32, i32, i32
  }
}

module attributes {stable_mosaic.version = 11 : i64} {
  func.func @kernel(%arg0: i32, %arg1: memref<2x18x128xf32, #tpu.memory_space<vmem>>, %arg2: memref<3x128x128xf32, #tpu.memory_space<vmem>>, %arg3: memref<1x128xf32, #tpu.memory_space<vmem>>, %arg4: memref<3x128x128xf32, #tpu.memory_space<vmem>>, %arg5: memref<1x128xf32, #tpu.memory_space<vmem>>, %arg6: memref<128x128xf32, #tpu.memory_space<vmem>>, %arg7: memref<1x128xf32, #tpu.memory_space<vmem>>, %arg8: memref<2x16x128xf32, #tpu.memory_space<vmem>>, %arg9: memref<2x18x128xf32, #tpu.memory_space<vmem>>) attributes {dimension_semantics = [#tpu.dimension_semantics<parallel>], iteration_bounds = array<i64: 1>, scalar_prefetch = 0 : i64, scratch_operands = 1 : i64, tpu.core_type = #tpu.core_type<tc>, window_params = [{transform_indices = @transform_0, window_bounds = array<i64: 2, 18, 128>}, {pipeline_mode = #tpu.pipeline_mode<synchronous>, transform_indices = @transform_1, window_bounds = array<i64: 3, 128, 128>}, {pipeline_mode = #tpu.pipeline_mode<synchronous>, transform_indices = @transform_2, window_bounds = array<i64: 1, 128>}, {pipeline_mode = #tpu.pipeline_mode<synchronous>, transform_indices = @transform_3, window_bounds = array<i64: 3, 128, 128>}, {pipeline_mode = #tpu.pipeline_mode<synchronous>, transform_indices = @transform_4, window_bounds = array<i64: 1, 128>}, {pipeline_mode = #tpu.pipeline_mode<synchronous>, transform_indices = @transform_5, window_bounds = array<i64: 128, 128>}, {pipeline_mode = #tpu.pipeline_mode<synchronous>, transform_indices = @transform_6, window_bounds = array<i64: 1, 128>}, {transform_indices = @transform_7, window_bounds = array<i64: 2, 16, 128>}]} {
    %c0 = arith.constant 0 : index
    %c1 = arith.constant 1 : index
    %c0_0 = arith.constant 0 : index
    %0 = vector.load %arg1[%c0, %c1, %c0_0] : memref<2x18x128xf32, #tpu.memory_space<vmem>>, vector<2x16x128xf32>
    %c0_1 = arith.constant 0 : index
    %c0_2 = arith.constant 0 : index
    %c0_3 = arith.constant 0 : index
    %1 = vector.load %arg1[%c0_1, %c0_2, %c0_3] : memref<2x18x128xf32, #tpu.memory_space<vmem>>, vector<2x16x128xf32>
    %c0_4 = arith.constant 0 : index
    %c0_5 = arith.constant 0 : index
    %c0_6 = arith.constant 0 : index
    %2 = vector.load %arg2[%c0_4, %c0_5, %c0_6] : memref<3x128x128xf32, #tpu.memory_space<vmem>>, vector<1x128x128xf32>
    %3 = vector.shape_cast %2 : vector<1x128x128xf32> to vector<128x128xf32>
    %4 = vector.shape_cast %1 : vector<2x16x128xf32> to vector<32x128xf32>
    %cst = arith.constant dense<0.000000e+00> : vector<32x128xf32>
    %5 = tpu.matmul %4, %3, %cst {dimension_numbers = #tpu.dot_dimension_numbers<[1], [0], [0], [1], [0, 0, 1, 1], [], []>} : vector<32x128xf32>, vector<128x128xf32>, vector<32x128xf32> -> vector<32x128xf32>
    %c0_7 = arith.constant 0 : index
    %c1_8 = arith.constant 1 : index
    %c0_9 = arith.constant 0 : index
    %6 = vector.load %arg1[%c0_7, %c1_8, %c0_9] : memref<2x18x128xf32, #tpu.memory_space<vmem>>, vector<2x16x128xf32>
    %c1_10 = arith.constant 1 : index
    %c0_11 = arith.constant 0 : index
    %c0_12 = arith.constant 0 : index
    %7 = vector.load %arg2[%c1_10, %c0_11, %c0_12] : memref<3x128x128xf32, #tpu.memory_space<vmem>>, vector<1x128x128xf32>
    %8 = vector.shape_cast %7 : vector<1x128x128xf32> to vector<128x128xf32>
    %9 = vector.shape_cast %6 : vector<2x16x128xf32> to vector<32x128xf32>
    %cst_13 = arith.constant dense<0.000000e+00> : vector<32x128xf32>
    %10 = tpu.matmul %9, %8, %cst_13 {dimension_numbers = #tpu.dot_dimension_numbers<[1], [0], [0], [1], [0, 0, 1, 1], [], []>} : vector<32x128xf32>, vector<128x128xf32>, vector<32x128xf32> -> vector<32x128xf32>
    %11 = arith.addf %5, %10 : vector<32x128xf32>
    %c0_14 = arith.constant 0 : index
    %c2 = arith.constant 2 : index
    %c0_15 = arith.constant 0 : index
    %12 = vector.load %arg1[%c0_14, %c2, %c0_15] : memref<2x18x128xf32, #tpu.memory_space<vmem>>, vector<2x16x128xf32>
    %c2_16 = arith.constant 2 : index
    %c0_17 = arith.constant 0 : index
    %c0_18 = arith.constant 0 : index
    %13 = vector.load %arg2[%c2_16, %c0_17, %c0_18] : memref<3x128x128xf32, #tpu.memory_space<vmem>>, vector<1x128x128xf32>
    %14 = vector.shape_cast %13 : vector<1x128x128xf32> to vector<128x128xf32>
    %15 = vector.shape_cast %12 : vector<2x16x128xf32> to vector<32x128xf32>
    %cst_19 = arith.constant dense<0.000000e+00> : vector<32x128xf32>
    %16 = tpu.matmul %15, %14, %cst_19 {dimension_numbers = #tpu.dot_dimension_numbers<[1], [0], [0], [1], [0, 0, 1, 1], [], []>} : vector<32x128xf32>, vector<128x128xf32>, vector<32x128xf32> -> vector<32x128xf32>
    %17 = arith.addf %11, %16 : vector<32x128xf32>
    %c0_20 = arith.constant 0 : index
    %c0_21 = arith.constant 0 : index
    %18 = vector.load %arg3[%c0_20, %c0_21] : memref<1x128xf32, #tpu.memory_space<vmem>>, vector<1x128xf32>
    %19 = vector.broadcast %18 : vector<1x128xf32> to vector<32x128xf32>
    %20 = arith.addf %17, %19 : vector<32x128xf32>
    %cst_22 = arith.constant 0.000000e+00 : f32
    %21 = vector.broadcast %cst_22 : f32 to vector<32x128xf32>
    %22 = arith.maximumf %20, %21 : vector<32x128xf32>
    %cst_23 = arith.constant 0.000000e+00 : f32
    %23 = vector.broadcast %cst_23 : f32 to vector<2x1x128xf32>
    %c0_24 = arith.constant 0 : index
    %c0_25 = arith.constant 0 : index
    %c0_26 = arith.constant 0 : index
    %24 = vector.load %arg9[%c0_24, %c0_25, %c0_26] : memref<2x18x128xf32, #tpu.memory_space<vmem>>, vector<2x1x128xf32>
    tpu.vector_store %arg9[%c0_24, %c0_25, %c0_26], %23 {strides = array<i32>} : memref<2x18x128xf32, #tpu.memory_space<vmem>>, vector<2x1x128xf32>,
    %cst_27 = arith.constant 0.000000e+00 : f32
    %25 = vector.broadcast %cst_27 : f32 to vector<2x1x128xf32>
    %c0_28 = arith.constant 0 : index
    %c17 = arith.constant 17 : index
    %c0_29 = arith.constant 0 : index
    %26 = vector.load %arg9[%c0_28, %c17, %c0_29] : memref<2x18x128xf32, #tpu.memory_space<vmem>>, vector<2x1x128xf32>
    tpu.vector_store %arg9[%c0_28, %c17, %c0_29], %25 {strides = array<i32>} : memref<2x18x128xf32, #tpu.memory_space<vmem>>, vector<2x1x128xf32>,
    %27 = vector.shape_cast %22 : vector<32x128xf32> to vector<2x16x128xf32>
    %c0_30 = arith.constant 0 : index
    %c1_31 = arith.constant 1 : index
    %c0_32 = arith.constant 0 : index
    %28 = vector.load %arg9[%c0_30, %c1_31, %c0_32] : memref<2x18x128xf32, #tpu.memory_space<vmem>>, vector<2x16x128xf32>
    tpu.vector_store %arg9[%c0_30, %c1_31, %c0_32], %27 {strides = array<i32>} : memref<2x18x128xf32, #tpu.memory_space<vmem>>, vector<2x16x128xf32>,
    %c0_33 = arith.constant 0 : index
    %c0_34 = arith.constant 0 : index
    %c0_35 = arith.constant 0 : index
    %29 = vector.load %arg9[%c0_33, %c0_34, %c0_35] : memref<2x18x128xf32, #tpu.memory_space<vmem>>, vector<2x16x128xf32>
    %c0_36 = arith.constant 0 : index
    %c0_37 = arith.constant 0 : index
    %c0_38 = arith.constant 0 : index
    %30 = vector.load %arg4[%c0_36, %c0_37, %c0_38] : memref<3x128x128xf32, #tpu.memory_space<vmem>>, vector<1x128x128xf32>
    %31 = vector.shape_cast %30 : vector<1x128x128xf32> to vector<128x128xf32>
    %32 = vector.shape_cast %29 : vector<2x16x128xf32> to vector<32x128xf32>
    %cst_39 = arith.constant dense<0.000000e+00> : vector<32x128xf32>
    %33 = tpu.matmul %32, %31, %cst_39 {dimension_numbers = #tpu.dot_dimension_numbers<[1], [0], [0], [1], [0, 0, 1, 1], [], []>} : vector<32x128xf32>, vector<128x128xf32>, vector<32x128xf32> -> vector<32x128xf32>
    %c0_40 = arith.constant 0 : index
    %c1_41 = arith.constant 1 : index
    %c0_42 = arith.constant 0 : index
    %34 = vector.load %arg9[%c0_40, %c1_41, %c0_42] : memref<2x18x128xf32, #tpu.memory_space<vmem>>, vector<2x16x128xf32>
    %c1_43 = arith.constant 1 : index
    %c0_44 = arith.constant 0 : index
    %c0_45 = arith.constant 0 : index
    %35 = vector.load %arg4[%c1_43, %c0_44, %c0_45] : memref<3x128x128xf32, #tpu.memory_space<vmem>>, vector<1x128x128xf32>
    %36 = vector.shape_cast %35 : vector<1x128x128xf32> to vector<128x128xf32>
    %37 = vector.shape_cast %34 : vector<2x16x128xf32> to vector<32x128xf32>
    %cst_46 = arith.constant dense<0.000000e+00> : vector<32x128xf32>
    %38 = tpu.matmul %37, %36, %cst_46 {dimension_numbers = #tpu.dot_dimension_numbers<[1], [0], [0], [1], [0, 0, 1, 1], [], []>} : vector<32x128xf32>, vector<128x128xf32>, vector<32x128xf32> -> vector<32x128xf32>
    %39 = arith.addf %33, %38 : vector<32x128xf32>
    %c0_47 = arith.constant 0 : index
    %c2_48 = arith.constant 2 : index
    %c0_49 = arith.constant 0 : index
    %40 = vector.load %arg9[%c0_47, %c2_48, %c0_49] : memref<2x18x128xf32, #tpu.memory_space<vmem>>, vector<2x16x128xf32>
    %c2_50 = arith.constant 2 : index
    %c0_51 = arith.constant 0 : index
    %c0_52 = arith.constant 0 : index
    %41 = vector.load %arg4[%c2_50, %c0_51, %c0_52] : memref<3x128x128xf32, #tpu.memory_space<vmem>>, vector<1x128x128xf32>
    %42 = vector.shape_cast %41 : vector<1x128x128xf32> to vector<128x128xf32>
    %43 = vector.shape_cast %40 : vector<2x16x128xf32> to vector<32x128xf32>
    %cst_53 = arith.constant dense<0.000000e+00> : vector<32x128xf32>
    %44 = tpu.matmul %43, %42, %cst_53 {dimension_numbers = #tpu.dot_dimension_numbers<[1], [0], [0], [1], [0, 0, 1, 1], [], []>} : vector<32x128xf32>, vector<128x128xf32>, vector<32x128xf32> -> vector<32x128xf32>
    %45 = arith.addf %39, %44 : vector<32x128xf32>
    %c0_54 = arith.constant 0 : index
    %c0_55 = arith.constant 0 : index
    %46 = vector.load %arg5[%c0_54, %c0_55] : memref<1x128xf32, #tpu.memory_space<vmem>>, vector<1x128xf32>
    %47 = vector.broadcast %46 : vector<1x128xf32> to vector<32x128xf32>
    %48 = arith.addf %45, %47 : vector<32x128xf32>
    %c0_56 = arith.constant 0 : index
    %c0_57 = arith.constant 0 : index
    %49 = vector.load %arg6[%c0_56, %c0_57] : memref<128x128xf32, #tpu.memory_space<vmem>>, vector<128x128xf32>
    %50 = vector.shape_cast %0 : vector<2x16x128xf32> to vector<32x128xf32>
    %cst_58 = arith.constant dense<0.000000e+00> : vector<32x128xf32>
    %51 = tpu.matmul %50, %49, %cst_58 {dimension_numbers = #tpu.dot_dimension_numbers<[1], [0], [0], [1], [0, 0, 1, 1], [], []>} : vector<32x128xf32>, vector<128x128xf32>, vector<32x128xf32> -> vector<32x128xf32>
    %c0_59 = arith.constant 0 : index
    %c0_60 = arith.constant 0 : index
    %52 = vector.load %arg7[%c0_59, %c0_60] : memref<1x128xf32, #tpu.memory_space<vmem>>, vector<1x128xf32>
    %53 = vector.broadcast %52 : vector<1x128xf32> to vector<32x128xf32>
    %54 = arith.addf %51, %53 : vector<32x128xf32>
    %55 = arith.addf %48, %54 : vector<32x128xf32>
    %cst_61 = arith.constant 0.000000e+00 : f32
    %56 = vector.broadcast %cst_61 : f32 to vector<32x128xf32>
    %57 = arith.maximumf %55, %56 : vector<32x128xf32>
    %58 = vector.shape_cast %57 : vector<32x128xf32> to vector<2x16x128xf32>
    %c0_62 = arith.constant 0 : index
    %c0_63 = arith.constant 0 : index
    %c0_64 = arith.constant 0 : index
    %59 = vector.load %arg8[%c0_62, %c0_63, %c0_64] : memref<2x16x128xf32, #tpu.memory_space<vmem>>, vector<2x16x128xf32>
    tpu.vector_store %arg8[%c0_62, %c0_63, %c0_64], %58 {strides = array<i32>} : memref<2x16x128xf32, #tpu.memory_space<vmem>>, vector<2x16x128xf32>,
    return
  }
  func.func @transform_0(%arg0: i32) -> (i32, i32, i32) {
    %c0_i32 = arith.constant 0 : i32
    %c0_i32_0 = arith.constant 0 : i32
    %c0_i32_1 = arith.constant 0 : i32
    return %arg0, %c0_i32, %c0_i32_0 : i32, i32, i32
  }
  func.func @transform_1(%arg0: i32) -> (i32, i32, i32) {
    %c0_i32 = arith.constant 0 : i32
    %c0_i32_0 = arith.constant 0 : i32
    %c0_i32_1 = arith.constant 0 : i32
    %c0_i32_2 = arith.constant 0 : i32
    return %c0_i32, %c0_i32_0, %c0_i32_1 : i32, i32, i32
  }
  func.func @transform_2(%arg0: i32) -> (i32, i32) {
    %c0_i32 = arith.constant 0 : i32
    %c0_i32_0 = arith.constant 0 : i32
    %c0_i32_1 = arith.constant 0 : i32
    return %c0_i32, %c0_i32_0 : i32, i32
  }
  func.func @transform_3(%arg0: i32) -> (i32, i32, i32) {
    %c0_i32 = arith.constant 0 : i32
    %c0_i32_0 = arith.constant 0 : i32
    %c0_i32_1 = arith.constant 0 : i32
    %c0_i32_2 = arith.constant 0 : i32
    return %c0_i32, %c0_i32_0, %c0_i32_1 : i32, i32, i32
  }
  func.func @transform_4(%arg0: i32) -> (i32, i32) {
    %c0_i32 = arith.constant 0 : i32
    %c0_i32_0 = arith.constant 0 : i32
    %c0_i32_1 = arith.constant 0 : i32
    return %c0_i32, %c0_i32_0 : i32, i32
  }
  func.func @transform_5(%arg0: i32) -> (i32, i32) {
    %c0_i32 = arith.constant 0 : i32
    %c0_i32_0 = arith.constant 0 : i32
    %c0_i32_1 = arith.constant 0 : i32
    return %c0_i32, %c0_i32_0 : i32, i32
  }
  func.func @transform_6(%arg0: i32) -> (i32, i32) {
    %c0_i32 = arith.constant 0 : i32
    %c0_i32_0 = arith.constant 0 : i32
    %c0_i32_1 = arith.constant 0 : i32
    return %c0_i32, %c0_i32_0 : i32, i32
  }
  func.func @transform_7(%arg0: i32) -> (i32, i32, i32) {
    %c0_i32 = arith.constant 0 : i32
    %c0_i32_0 = arith.constant 0 : i32
    %c0_i32_1 = arith.constant 0 : i32
    return %arg0, %c0_i32, %c0_i32_0 : i32, i32, i32
  }
}

</mosaic_0001>

<bundles_post_ra>
// kernel: tpu_custom_call.1
= control target key start
LH: loop header
LB: loop body
LE: loop exit
PB: predicated region body
PF: predicated region fallthrough
CT: control target
= control target key end

     0   :  { %12 = vsyncpa [#allocation4], 0  ;;  %s1608_s0 = inlined_call_operand.vmem [shape: f32[2,18,128], index: 0, kind: input, shape index: {}]   ;;  %s1609_s1 = inlined_call_operand.hbm [shape: f32[3,128,128], index: 1, kind: input, shape index: {}]   ;;  %s1610_s2 = inlined_call_operand.vmem [shape: f32[1,128], index: 2, kind: input, shape index: {}]   ;;  %s1611_s3 = inlined_call_operand.hbm [shape: f32[3,128,128], index: 3, kind: input, shape index: {}]   ;;  %s1612_s4 = inlined_call_operand.vmem [shape: f32[1,128], index: 4, kind: input, shape index: {}]   ;;  %s1613_s5 = inlined_call_operand.hbm [shape: f32[128,128], index: 5, kind: input, shape index: {}]   ;;  %s1614_s6 = inlined_call_operand.vmem [shape: f32[1,128], index: 6, kind: input, shape index: {}]   ;;  %s1615_s7 = inlined_call_operand.hbm [shape: f32[2,16,128], index: 7, kind: output, shape index: {}]  }
   0x1   :  { %13 = vsyncpa [#allocation7], 0 }
   0x2   :  { %14 = vsyncpa [#allocation5], 0  ;;  %s1416_s24 = smov [#allocation6]   ;;  %s1417_s26 = smov [#allocation3]  }
   0x3   :  { %s36_s25 = sshll.u32 %s1416_s24, 4  ;;  %s22_s27 = sshll.u32 %s1417_s26, 4  ;;  %s37_s25 = int_to_ptr.vmem [resolvable:$true] %s36_s25  ;;  %s23_s27 = int_to_ptr.vmem [resolvable:$true] %s22_s27 }
   0x4   :  { %s1338_s28 = scalar_lea.vmem %s37_s25, 6144  ;;  %p1343_p1 = scmp.lt.s32.totalorder %s37_s25, %s37_s25 }
   0x5   :  { %p1339_p0 = scmp.ne.s32.totalorder %s37_s25, %s1338_s28  ;;  %p1344_p2 = scmp.lt.s32.totalorder %s1338_s28, %s1338_s28 }
   0x7   :  { %p1345_p3 = por %p1344_p2, %p1343_p1 }
   0x9   :  { %p1346_p4 = pnand %p1345_p3, %p1339_p0 }
   0xb   :  { %1349 = shalt.err (!%p1346_p4)
}
   0xc   :  { %s1418_s29 = smov 128   ;;  %s1419_s30 = smov 8  }
   0xd   :  { %42 = dma.hbm_to_vmem [thread:$0]  %s1611_s3, 6144, %s37_s25, [#allocation7], %s1418_s29, %s1418_s29, %s1419_s30  }
   0xe   :  { %s1358_s10 = scalar_lea.vmem %s23_s27, 6144  ;;  %p1363_p6 = scmp.lt.s32.totalorder %s23_s27, %s23_s27 }
   0xf   :  { %p1359_p5 = scmp.ne.s32.totalorder %s23_s27, %s1358_s10  ;;  %p1364_p7 = scmp.lt.s32.totalorder %s1358_s10, %s1358_s10 }
  0x11   :  { %p1365_p8 = por %p1364_p7, %p1363_p6 }
  0x13   :  { %p1366_p9 = pnand %p1365_p8, %p1359_p5 }
  0x15   :  { %1369 = shalt.err (!%p1366_p9)
}
  0x16   :  { %28 = dma.hbm_to_vmem [thread:$0]  %s1609_s1, 6144, %s23_s27, [#allocation4], %s1418_s29, %s1418_s29, %s1419_s30  }
  0x17   :  { %s1420_s13 = smov [#allocation8]  }
  0x18   :  { %s50_s14 = sshll.u32 %s1420_s13, 4  ;;  %s51_s14 = int_to_ptr.vmem [resolvable:$true] %s50_s14 }
  0x19   :  { %s1378_s15 = scalar_lea.vmem %s51_s14, 2048  ;;  %p1383_p11 = scmp.lt.s32.totalorder %s51_s14, %s51_s14 }
  0x1a   :  { %p1379_p10 = scmp.ne.s32.totalorder %s51_s14, %s1378_s15  ;;  %p1384_p12 = scmp.lt.s32.totalorder %s1378_s15, %s1378_s15 }
  0x1c   :  { %p1385_p13 = por %p1384_p12, %p1383_p11 }
  0x1e   :  { %p1386_p0 = pnand %p1385_p13, %p1379_p10 }
  0x20   :  { %1389 = shalt.err (!%p1386_p0)
}
  0x21   :  { %56 = dma.hbm_to_vmem [thread:$0]  %s1613_s5, 2048, %s51_s14, [#allocation7], %s1418_s29, %s1418_s29, %s1419_s30  }
  0x22   :  { %1410 = dma.done.wait [#allocation4], 6144  }
  0x23   :  { %1411 = vsyncadd [#allocation4], 4294961152 }
  0x24   :  { %1412 = dma.done.wait [#allocation7], 8192  }
  0x25   :  { %1413 = vsyncadd [#allocation7], 4294959104  ;;  %v108_v0 = vld [vmem:[#allocation3 + $0xf8] sm:$0xff]  ;;  %v107_v2 = vld [vmem:[#allocation3 + $0xf0] sm:$0xff] }
  0x26   :  { %v91_v1 = vld [vmem:[#allocation3 + $0x78] sm:$0xff]  ;;  %1025 = vmatprep.subr.mxu0 %v108_v0  ;;  %v90_v3 = vld [vmem:[#allocation3 + $0x70] sm:$0xff]  ;;  %v106_v4 = vld [vmem:[#allocation3 + $0xe8] sm:$0xff] }
  0x27   :  { %1063 = vmatprep.subr.mxu1 %v91_v1  ;;  %1026 = vmatpush3.msra.mxu0 %v108_v0  ;;  %v89_v5 = vld [vmem:[#allocation3 + $0x68] sm:$0xff]  ;;  %v105_v6 = vld [vmem:[#allocation3 + $0xe0] sm:$0xff]  ;;  %v104_v8 = vld [vmem:[#allocation3 + $0xd8] sm:$0xff] }
  0x28   :  { %1064 = vmatpush3.msra.mxu1 %v91_v1  ;;  %1027 = vmatprep.subr.mxu0 %v107_v2  ;;  %v88_v7 = vld [vmem:[#allocation3 + $0x60] sm:$0xff]  ;;  %v87_v9 = vld [vmem:[#allocation3 + $0x58] sm:$0xff]  ;;  %v103_v10 = vld [vmem:[#allocation3 + $0xd0] sm:$0xff] }
  0x29   :  { %1065 = vmatprep.subr.mxu1 %v90_v3  ;;  %1028 = vmatpush3.msra.mxu0 %v107_v2  ;;  %v86_v11 = vld [vmem:[#allocation3 + $0x50] sm:$0xff]  ;;  %v102_v12 = vld [vmem:[#allocation3 + $0xc8] sm:$0xff]  ;;  %v101_v14 = vld [vmem:[#allocation3 + $0xc0] sm:$0xff] }
  0x2a   :  { %1066 = vmatpush3.msra.mxu1 %v90_v3  ;;  %1029 = vmatprep.subr.mxu0 %v106_v4  ;;  %v85_v13 = vld [vmem:[#allocation3 + $0x48] sm:$0xff]  ;;  %v84_v15 = vld [vmem:[#allocation3 + $0x40] sm:$0xff]  ;;  %v100_v16 = vld [vmem:[#allocation3 + $0xb8] sm:$0xff] }
  0x2b   :  { %1067 = vmatprep.subr.mxu1 %v89_v5  ;;  %1030 = vmatpush3.msra.mxu0 %v106_v4  ;;  %v83_v17 = vld [vmem:[#allocation3 + $0x38] sm:$0xff]  ;;  %v99_v18 = vld [vmem:[#allocation3 + $0xb0] sm:$0xff]  ;;  %v98_v20 = vld [vmem:[#allocation3 + $0xa8] sm:$0xff] }
  0x2c   :  { %1068 = vmatpush3.msra.mxu1 %v89_v5  ;;  %1031 = vmatprep.subr.mxu0 %v105_v6  ;;  %v82_v19 = vld [vmem:[#allocation3 + $0x30] sm:$0xff]  ;;  %v81_v21 = vld [vmem:[#allocation3 + $0x28] sm:$0xff]  ;;  %v97_v22 = vld [vmem:[#allocation3 + $0xa0] sm:$0xff] }
  0x2d   :  { %1069 = vmatprep.subr.mxu1 %v88_v7  ;;  %1032 = vmatpush3.msra.mxu0 %v105_v6  ;;  %v80_v23 = vld [vmem:[#allocation3 + $0x20] sm:$0xff]  ;;  %v96_v24 = vld [vmem:[#allocation3 + $0x98] sm:$0xff]  ;;  %v95_v26 = vld [vmem:[#allocation3 + $0x90] sm:$0xff] }
  0x2e   :  { %1070 = vmatpush3.msra.mxu1 %v88_v7  ;;  %1033 = vmatprep.subr.mxu0 %v104_v8  ;;  %v79_v25 = vld [vmem:[#allocation3 + $0x18] sm:$0xff]  ;;  %v78_v27 = vld [vmem:[#allocation3 + $0x10] sm:$0xff]  ;;  %v94_v28 = vld [vmem:[#allocation3 + $0x88] sm:$0xff] }
  0x2f   :  { %1071 = vmatprep.subr.mxu1 %v87_v9  ;;  %1034 = vmatpush3.msra.mxu0 %v104_v8  ;;  %v77_v29 = vld [vmem:[#allocation3 + $0x8] sm:$0xff]  ;;  %v93_v30 = vld [vmem:[#allocation3 + $0x80] sm:$0xff]  ;;  %v1484_v32 = vld [vmem:[%s1608_s0 + $0x1] sm:$0xff] }
  0x30   :  { %1072 = vmatpush3.msra.mxu1 %v87_v9  ;;  %1035 = vmatprep.subr.mxu0 %v103_v10  ;;  %v76_v31 = vld [vmem:[#allocation3] sm:$0xff]  ;;  %v72_v33 = vld [vmem:[%s1608_s0] sm:$0xff]  ;;  %v73_v35 = vld [vmem:[%s1608_s0 + $0x8] sm:$0xff] }
  0x31   :  { %1073 = vmatprep.subr.mxu1 %v86_v11  ;;  %1036 = vmatpush3.msra.mxu0 %v103_v10  ;;  %v1492_v34 = vld [vmem:[%s1608_s0 + $0x9] sm:$0xff]  ;;  %v1501_v37 = vld [vmem:[%s1608_s0 + $0x19] sm:$0xff]  ;;  %v1514_v42 = vld [vmem:[%s1608_s0 + $0x21] sm:$0xff] }
  0x32   :  { %1074 = vmatpush3.msra.mxu1 %v86_v11  ;;  %1037 = vmatprep.subr.mxu0 %v102_v12  ;;  %v299_v36 = vld [vmem:[#allocation3 + $0x178] sm:$0xff]  ;;  %v74_v38 = vld [vmem:[%s1608_s0 + $0x18] sm:$0xff]  ;;  %v298_v39 = vld [vmem:[#allocation3 + $0x170] sm:$0xff] }
  0x33   :  { %1075 = vmatprep.subr.mxu1 %v85_v13  ;;  %1038 = vmatpush3.msra.mxu0 %v102_v12  ;;  %v75_v40 = vld [vmem:[%s1608_s0 + $0x20] sm:$0xff]  ;;  %v297_v41 = vld [vmem:[#allocation3 + $0x168] sm:$0xff]  ;;  %v296_v44 = vld [vmem:[#allocation3 + $0x160] sm:$0xff] }
  0x34   :  { %1076 = vmatpush3.msra.mxu1 %v85_v13  ;;  %1039 = vmatprep.subr.mxu0 %v101_v14  ;;  %v279_v43 = vld [vmem:[%s1608_s0 + $0x2] sm:$0xff]  ;;  %v293_v47 = vld [vmem:[#allocation3 + $0x148] sm:$0xff]  ;;  %v292_v48 = vld [vmem:[#allocation3 + $0x140] sm:$0xff] }
  0x35   :  { %1077 = vmatprep.subr.mxu1 %v84_v15  ;;  %1040 = vmatpush3.msra.mxu0 %v101_v14  ;;  %v295_v45 = vld [vmem:[#allocation3 + $0x158] sm:$0xff]  ;;  %v294_v46 = vld [vmem:[#allocation3 + $0x150] sm:$0xff]  ;;  %v289_v51 = vld [vmem:[#allocation3 + $0x128] sm:$0xff] }
  0x36   :  { %1078 = vmatpush3.msra.mxu1 %v84_v15  ;;  %1041 = vmatprep.subr.mxu0 %v100_v16  ;;  %v291_v49 = vld [vmem:[#allocation3 + $0x138] sm:$0xff]  ;;  %v290_v50 = vld [vmem:[#allocation3 + $0x130] sm:$0xff]  ;;  %v288_v52 = vld [vmem:[#allocation3 + $0x120] sm:$0xff] }
  0x37   :  { %1079 = vmatprep.subr.mxu1 %v83_v17  ;;  %1042 = vmatpush3.msra.mxu0 %v100_v16  ;;  %v287_v53 = vld [vmem:[#allocation3 + $0x118] sm:$0xff]  ;;  %v286_v54 = vld [vmem:[#allocation3 + $0x110] sm:$0xff]  ;;  %v285_v55 = vld [vmem:[#allocation3 + $0x108] sm:$0xff] }
  0x38   :  { %1080 = vmatpush3.msra.mxu1 %v83_v17  ;;  %1043 = vmatprep.subr.mxu0 %v99_v18  ;;  %v284_v56 = vld [vmem:[#allocation3 + $0x100] sm:$0xff]  ;;  %v281_v58 = vld [vmem:[%s1608_s0 + $0x1a] sm:$0xff]  ;;  %v282_v59 = vld [vmem:[%s1608_s0 + $0x22] sm:$0xff] }
  0x39   :  { %1081 = vmatprep.subr.mxu1 %v82_v19  ;;  %1044 = vmatpush3.msra.mxu0 %v99_v18  ;;  %v280_v57 = vld [vmem:[%s1608_s0 + $0xa] sm:$0xff]  ;;  %v451_v62 = vld [vmem:[#allocation6 + $0xf0] sm:$0xff]  ;;  %v450_v0 = vld [vmem:[#allocation6 + $0xe8] sm:$0xff] }
  0x3a   :  { %1082 = vmatpush3.msra.mxu1 %v82_v19  ;;  %1045 = vmatprep.subr.mxu0 %v98_v20  ;;  %v452_v60 = vld [vmem:[#allocation6 + $0xf8] sm:$0xff]  ;;  %v430_v63 = vld [vmem:[#allocation6 + $0x70] sm:$0xff]  ;;  %v429_v1 = vld [vmem:[#allocation6 + $0x68] sm:$0xff] }
  0x3b   :  { %1083 = vmatprep.subr.mxu1 %v81_v21  ;;  %1046 = vmatpush3.msra.mxu0 %v98_v20  ;;  %v431_v61 = vld [vmem:[#allocation6 + $0x78] sm:$0xff]  ;;  %v449_v2 = vld [vmem:[#allocation6 + $0xe0] sm:$0xff]  ;;  %v447_v6 = vld [vmem:[#allocation6 + $0xd0] sm:$0xff] }
  0x3c   :  { %1084 = vmatpush3.msra.mxu1 %v81_v21  ;;  %1047 = vmatprep.subr.mxu0 %v97_v22  ;;  %v428_v3 = vld [vmem:[#allocation6 + $0x60] sm:$0xff]  ;;  %v448_v4 = vld [vmem:[#allocation6 + $0xd8] sm:$0xff]  ;;  %v426_v7 = vld [vmem:[#allocation6 + $0x50] sm:$0xff] }
  0x3d   :  { %1085 = vmatprep.subr.mxu1 %v80_v23  ;;  %1048 = vmatpush3.msra.mxu0 %v97_v22  ;;  %v427_v5 = vld [vmem:[#allocation6 + $0x58] sm:$0xff]  ;;  %v446_v8 = vld [vmem:[#allocation6 + $0xc8] sm:$0xff]  ;;  %v445_v10 = vld [vmem:[#allocation6 + $0xc0] sm:$0xff] }
  0x3e   :  { %1086 = vmatpush3.msra.mxu1 %v80_v23  ;;  %1049 = vmatprep.subr.mxu0 %v96_v24  ;;  %v425_v9 = vld [vmem:[#allocation6 + $0x48] sm:$0xff]  ;;  %v444_v11 = vld [vmem:[#allocation6 + $0xb8] sm:$0xff]  ;;  %v443_v12 = vld [vmem:[#allocation6 + $0xb0] sm:$0xff] }
  0x3f   :  { %1087 = vmatprep.subr.mxu1 %v79_v25  ;;  %1050 = vmatpush3.msra.mxu0 %v96_v24  ;;  %v442_v13 = vld [vmem:[#allocation6 + $0xa8] sm:$0xff]  ;;  %v424_v14 = vld [vmem:[#allocation6 + $0x40] sm:$0xff]  ;;  %v423_v16 = vld [vmem:[#allocation6 + $0x38] sm:$0xff]  ;;  %v1421_v24 = vmov 0.0  }
  0x40   :  { %1088 = vmatpush3.msra.mxu1 %v79_v25  ;;  %1051 = vmatprep.subr.mxu0 %v95_v26  ;;  %v441_v15 = vld [vmem:[#allocation6 + $0xa0] sm:$0xff]  ;;  %v440_v17 = vld [vmem:[#allocation6 + $0x98] sm:$0xff]  ;;  %v422_v18 = vld [vmem:[#allocation6 + $0x30] sm:$0xff]  ;;  %404 = vst [vmem:[#allocation2] sm:$0x1] %v1421_v24 }
  0x41   :  { %1089 = vmatprep.subr.mxu1 %v78_v27  ;;  %1052 = vmatpush3.msra.mxu0 %v95_v26  ;;  %v439_v19 = vld [vmem:[#allocation6 + $0x90] sm:$0xff]  ;;  %v421_v20 = vld [vmem:[#allocation6 + $0x28] sm:$0xff]  ;;  %v420_v22 = vld [vmem:[#allocation6 + $0x20] sm:$0xff]  ;;  %405 = vst [vmem:[#allocation2 + $0x18] sm:$0x1] %v1421_v24 }
  0x42   :  { %1090 = vmatpush3.msra.mxu1 %v78_v27  ;;  %1053 = vmatprep.subr.mxu0 %v94_v28  ;;  %v438_v21 = vld [vmem:[#allocation6 + $0x88] sm:$0xff]  ;;  %v437_v23 = vld [vmem:[#allocation6 + $0x80] sm:$0xff]  ;;  %406 = vst [vmem:[#allocation2 + $0x11] sm:$0x1] %v1421_v24  ;;  %407 = vst [vmem:[#allocation2 + $0x29] sm:$0x1] %v1421_v24 }
  0x43   :  { %1091 = vmatprep.subr.mxu1 %v77_v29  ;;  %1054 = vmatpush3.msra.mxu0 %v94_v28  ;;  %v419_v25 = vld [vmem:[#allocation6 + $0x18] sm:$0xff]  ;;  %v418_v27 = vld [vmem:[#allocation6 + $0x10] sm:$0xff]  ;;  %v417_v28 = vld [vmem:[#allocation6 + $0x8] sm:$0xff] }
  0x44   :  { %1092 = vmatpush3.msra.mxu1 %v77_v29  ;;  %1055 = vmatprep.subr.mxu0 %v93_v30  ;;  %v643_v26 = vld [vmem:[#allocation6 + $0x178] sm:$0xff]  ;;  %v416_v29 = vld [vmem:[#allocation6] sm:$0xff]  ;;  %v1566_v24 = vld [vmem:[#allocation8 + $0x30] sm:$0xff] }
  0x45   :  { %1093 = vmatprep.subr.mxu1 %v76_v31  ;;  %1056 = vmatpush3.msra.mxu0 %v93_v30  ;;  %v1529_v30 = vld [vmem:[#allocation8 + $0x78] sm:$0xff] }
  0x46   :  { %1057 = vmatprep.mubr.f32.mxu0 %v1484_v32  ;;  %1094 = vmatpush3.msra.mxu1 %v76_v31 }
  0x47   :  { %1095 = vmatprep.mubr.f32.mxu1 %v72_v33  ;;  %1058 = vmatmul.mubr.f32.vlgmr.msra.gmra.mxu0 %v1492_v34 }
  0x48   :  { %1096 = vmatmul.mubr.f32.vlgmr.msra.gmra.mxu1 %v73_v35  ;;  %1101 = vmatprep.subr.mxu0 %v299_v36 }
  0x49   :  { %1060 = vmatprep.mubr.f32.mxu0 %v1501_v37  ;;  %1102 = vmatpush3.msra.mxu0 %v299_v36 }
  0x4a   :  { %1098 = vmatprep.mubr.f32.mxu1 %v74_v38  ;;  %1103 = vmatprep.subr.mxu0 %v298_v39 }
  0x4b   :  { %1104 = vmatpush3.msra.mxu0 %v298_v39  ;;  %1139 = vmatprep.subr.mxu1 %v452_v60 }
  0x4c   :  { %1099 = vmatmul.mubr.f32.gmra.mxu1 %v75_v40  ;;  %1105 = vmatprep.subr.mxu0 %v297_v41 }
  0x4d   :  { %1061 = vmatmul.mubr.f32.gmra.mxu0 %v1514_v42  ;;  %1140 = vmatpush3.msra.mxu1 %v452_v60 }
  0x4e   :  { %1106 = vmatpush3.msra.mxu0 %v297_v41  ;;  %1133 = vmatprep.mubr.f32.mxu0 %v279_v43 }
  0x4f   :  { %1107 = vmatprep.subr.mxu0 %v296_v44  ;;  %1141 = vmatprep.subr.mxu1 %v451_v62 }
  0x50   :  { %1108 = vmatpush3.msra.mxu0 %v296_v44  ;;  %1142 = vmatpush3.msra.mxu1 %v451_v62  ;;  %v882_v44 = vld [vmem:[%s1610_s2] ss:$0 sm:$0xff] }
  0x51   :  { %1109 = vmatprep.subr.mxu0 %v295_v45  ;;  %1143 = vmatprep.subr.mxu1 %v450_v0 }
  0x52   :  { %1110 = vmatpush3.msra.mxu0 %v295_v45  ;;  %1144 = vmatpush3.msra.mxu1 %v450_v0 }
  0x53   :  { %1111 = vmatprep.subr.mxu0 %v294_v46  ;;  %1145 = vmatprep.subr.mxu1 %v449_v2 }
  0x54   :  { %1112 = vmatpush3.msra.mxu0 %v294_v46  ;;  %1146 = vmatpush3.msra.mxu1 %v449_v2  ;;  %v640_v2 = vld [vmem:[#allocation6 + $0x160] sm:$0xff] }
  0x55   :  { %1113 = vmatprep.subr.mxu0 %v293_v47  ;;  %1147 = vmatprep.subr.mxu1 %v448_v4 }
  0x56   :  { %1114 = vmatpush3.msra.mxu0 %v293_v47  ;;  %1148 = vmatpush3.msra.mxu1 %v448_v4 }
  0x57   :  { %1115 = vmatprep.subr.mxu0 %v292_v48  ;;  %1149 = vmatprep.subr.mxu1 %v447_v6 }
  0x58   :  { %1116 = vmatpush3.msra.mxu0 %v292_v48  ;;  %1150 = vmatpush3.msra.mxu1 %v447_v6 }
  0x59   :  { %1117 = vmatprep.subr.mxu0 %v291_v49  ;;  %1151 = vmatprep.subr.mxu1 %v446_v8 }
  0x5a   :  { %1118 = vmatpush3.msra.mxu0 %v291_v49  ;;  %1152 = vmatpush3.msra.mxu1 %v446_v8  ;;  %v1538_v8 = vld [vmem:[#allocation8 + $0x68] sm:$0xff] }
  0x5b   :  { %1119 = vmatprep.subr.mxu0 %v290_v50  ;;  %1153 = vmatprep.subr.mxu1 %v445_v10 }
  0x5c   :  { %1120 = vmatpush3.msra.mxu0 %v290_v50  ;;  %1154 = vmatpush3.msra.mxu1 %v445_v10 }
  0x5d   :  { %1121 = vmatprep.subr.mxu0 %v289_v51  ;;  %1155 = vmatprep.subr.mxu1 %v444_v11 }
  0x5e   :  { %1122 = vmatpush3.msra.mxu0 %v289_v51  ;;  %1156 = vmatpush3.msra.mxu1 %v444_v11  ;;  %v638_v11 = vld [vmem:[#allocation6 + $0x150] sm:$0xff] }
  0x5f   :  { %1123 = vmatprep.subr.mxu0 %v288_v52  ;;  %1157 = vmatprep.subr.mxu1 %v443_v12 }
  0x60   :  { %1124 = vmatpush3.msra.mxu0 %v288_v52  ;;  %1158 = vmatpush3.msra.mxu1 %v443_v12  ;;  %v1542_v12 = vld [vmem:[#allocation8 + $0x60] sm:$0xff] }
  0x61   :  { %1125 = vmatprep.subr.mxu0 %v287_v53  ;;  %1159 = vmatprep.subr.mxu1 %v442_v13 }
  0x62   :  { %1126 = vmatpush3.msra.mxu0 %v287_v53  ;;  %1160 = vmatpush3.msra.mxu1 %v442_v13  ;;  %v637_v13 = vld [vmem:[#allocation6 + $0x148] sm:$0xff] }
  0x63   :  { %1127 = vmatprep.subr.mxu0 %v286_v54  ;;  %1161 = vmatprep.subr.mxu1 %v441_v15 }
  0x64   :  { %1128 = vmatpush3.msra.mxu0 %v286_v54  ;;  %1162 = vmatpush3.msra.mxu1 %v441_v15  ;;  %v636_v15 = vld [vmem:[#allocation6 + $0x140] sm:$0xff] }
  0x65   :  { %1129 = vmatprep.subr.mxu0 %v285_v55  ;;  %1163 = vmatprep.subr.mxu1 %v440_v17 }
  0x66   :  { %1130 = vmatpush3.msra.mxu0 %v285_v55  ;;  %1164 = vmatpush3.msra.mxu1 %v440_v17  ;;  %v635_v17 = vld [vmem:[#allocation6 + $0x138] sm:$0xff] }
  0x67   :  { %1131 = vmatprep.subr.mxu0 %v284_v56  ;;  %1165 = vmatprep.subr.mxu1 %v439_v19 }
  0x68   :  { %1132 = vmatpush3.msra.mxu0 %v284_v56  ;;  %1166 = vmatpush3.msra.mxu1 %v439_v19  ;;  %v634_v19 = vld [vmem:[#allocation6 + $0x130] sm:$0xff] }
  0x69   :  { %1134 = vmatmul.mubr.f32.vlgmr.msra.gmra.mxu0 %v280_v57  ;;  %1177 = vmatprep.subr.mxu0 %v431_v61 }
  0x6a   :  { %1136 = vmatprep.mubr.f32.mxu0 %v281_v58  ;;  %1178 = vmatpush3.msra.mxu0 %v431_v61 }
  0x6b   :  { %1179 = vmatprep.subr.mxu0 %v430_v63  ;;  %1167 = vmatprep.subr.mxu1 %v438_v21 }
  0x6c   :  { %1180 = vmatpush3.msra.mxu0 %v430_v63  ;;  %1168 = vmatpush3.msra.mxu1 %v438_v21  ;;  %v642_v63 = vld [vmem:[#allocation6 + $0x170] sm:$0xff]  ;;  %v633_v21 = vld [vmem:[#allocation6 + $0x128] sm:$0xff] }
  0x6d   :  { %1137 = vmatmul.mubr.f32.gmra.mxu0 %v282_v59  ;;  %1181 = vmatprep.subr.mxu0 %v429_v1 }
  0x6e   :  { %1182 = vmatpush3.msra.mxu0 %v429_v1  ;;  %1169 = vmatprep.subr.mxu1 %v437_v23  ;;  %v641_v1 = vld [vmem:[#allocation6 + $0x168] sm:$0xff] }
  0x6f   :  { %1183 = vmatprep.subr.mxu0 %v428_v3  ;;  %1170 = vmatpush3.msra.mxu1 %v437_v23  ;;  %v632_v23 = vld [vmem:[#allocation6 + $0x120] sm:$0xff] }
  0x70   :  { %1184 = vmatpush3.msra.mxu0 %v428_v3  ;;  %1215 = vmatprep.subr.mxu1 %v643_v26  ;;  %v639_v3 = vld [vmem:[#allocation6 + $0x158] sm:$0xff] }
  0x71   :  { %1185 = vmatprep.subr.mxu0 %v427_v5 }
  0x72   :  { %1186 = vmatpush3.msra.mxu0 %v427_v5 }
  0x73   :  { %1187 = vmatprep.subr.mxu0 %v426_v7 }
  0x74   :  { %1188 = vmatpush3.msra.mxu0 %v426_v7  ;;  %v1535_v7 = vld [vmem:[#allocation8 + $0x70] sm:$0xff] }
  0x75   :  { %1189 = vmatprep.subr.mxu0 %v425_v9 }
  0x76   :  { %1190 = vmatpush3.msra.mxu0 %v425_v9 }
  0x77   :  { %1191 = vmatprep.subr.mxu0 %v424_v14 }
  0x78   :  { %1192 = vmatpush3.msra.mxu0 %v424_v14  ;;  %v1546_v14 = vld [vmem:[#allocation8 + $0x58] sm:$0xff] }
  0x79   :  { %1193 = vmatprep.subr.mxu0 %v423_v16 }
  0x7a   :  { %1194 = vmatpush3.msra.mxu0 %v423_v16  ;;  %v1550_v16 = vld [vmem:[#allocation8 + $0x50] sm:$0xff] }
  0x7b   :  { %1195 = vmatprep.subr.mxu0 %v422_v18 }
  0x7c   :  { %1196 = vmatpush3.msra.mxu0 %v422_v18  ;;  %v1554_v18 = vld [vmem:[#allocation8 + $0x48] sm:$0xff] }
  0x7d   :  { %1197 = vmatprep.subr.mxu0 %v421_v20 }
  0x7e   :  { %1198 = vmatpush3.msra.mxu0 %v421_v20  ;;  %v1558_v20 = vld [vmem:[#allocation8 + $0x40] sm:$0xff] }
  0x7f   :  { %1199 = vmatprep.subr.mxu0 %v420_v22 }
  0x80   :  { %1200 = vmatpush3.msra.mxu0 %v420_v22  ;;  %v1562_v22 = vld [vmem:[#allocation8 + $0x38] sm:$0xff] }
  0x81   :  { %1201 = vmatprep.subr.mxu0 %v419_v25 }
  0x82   :  { %1202 = vmatpush3.msra.mxu0 %v419_v25  ;;  %v631_v25 = vld [vmem:[#allocation6 + $0x118] sm:$0xff] }
  0x83   :  { %1203 = vmatprep.subr.mxu0 %v418_v27 }
  0x84   :  { %1204 = vmatpush3.msra.mxu0 %v418_v27  ;;  %v630_v27 = vld [vmem:[#allocation6 + $0x110] sm:$0xff] }
  0x85   :  { %1205 = vmatprep.subr.mxu0 %v417_v28 }
  0x86   :  { %1206 = vmatpush3.msra.mxu0 %v417_v28  ;;  %v748_v28 = vld [vmem:[#allocation8 + $0x20] sm:$0xff] }
  0x87   :  { %1207 = vmatprep.subr.mxu0 %v416_v29 }
  0x88   :  { %1208 = vmatpush3.msra.mxu0 %v416_v29  ;;  %v629_v29 = vld [vmem:[#allocation6 + $0x108] sm:$0xff] }
  0x89   :  { %1253 = vmatprep.subr.mxu0 %v1529_v30 }
 0x107   :  { %v1059_v31 = vpop.f32.mrf.mxu0 }
 0x108   :  { %v1097_v33 = vpop.f32.mrf.mxu1 }
 0x109   :  { %v175_v35 = vpop.f32.mrf.mxu0  ;;  %v266_v41 = vadd.f32 %v1097_v33, %v1059_v31  ;;  %v747_v31 = vld [vmem:[#allocation8 + $0x18] sm:$0xff]  ;;  %v628_v33 = vld [vmem:[#allocation6 + $0x100] sm:$0xff] }
 0x10a   :  { %v260_v38 = vpop.f32.mrf.mxu1 }
 0x10b   :  { %v261_v45 = vadd.f32 %v260_v38, %v175_v35  ;;  %v746_v35 = vld [vmem:[#allocation8 + $0x10] sm:$0xff] }
 0x10c   :  { %v1100_v39 = vpop.f32.mrf.mxu1 }
 0x10d   :  { %v1062_v36 = vpop.f32.mrf.mxu0 }
 0x10e   :  { %v270_v47 = vpop.f32.mrf.mxu1  ;;  %v276_v49 = vadd.f32 %v1100_v39, %v1062_v36  ;;  %v745_v36 = vld [vmem:[#allocation8 + $0x8] sm:$0xff]  ;;  %v744_v39 = vld [vmem:[#allocation8] sm:$0xff] }
 0x10f   :  { %v185_v40 = vpop.f32.mrf.mxu0 }
 0x110   :  { %v271_v53 = vadd.f32 %v270_v47, %v185_v40 }
 0x129   :  { %v1135_v43 = vpop.f32.mrf.mxu0 }
 0x12a   :  { %v386_v46 = vadd.f32 %v1135_v43, %v266_v41 }
 0x12b   :  { %v366_v48 = vpop.f32.mrf.mxu0 }
 0x12c   :  { %v397_v50 = vadd.f32 %v882_v44, %v386_v46  ;;  %v385_v51 = vadd.f32 %v366_v48, %v261_v45 }
 0x12d   :  { %v1138_v52 = vpop.f32.mrf.mxu0 }
 0x12e   :  { %v401_v54 = vmax.f32 %v397_v50, 0.0  ;;  %v396_v55 = vadd.f32 %v882_v44, %v385_v51  ;;  %v388_v56 = vadd.f32 %v1138_v52, %v276_v49  ;;  %v883_v52 = vld [vmem:[%s1612_s4] ss:$0 sm:$0xff]  ;;  %s1422_s4 = smov [#allocation9]  }
 0x12f   :  { %v376_v57 = vpop.f32.mrf.mxu0 }
 0x130   :  { %409 = vst [vmem:[#allocation2 + $0x9] sm:$0xff] %v401_v54  ;;  %v400_v58 = vmax.f32 %v396_v55, 0.0  ;;  %v399_v59 = vadd.f32 %v882_v44, %v388_v56  ;;  %v387_v60 = vadd.f32 %v376_v57, %v271_v53 }
 0x132   :  { %408 = vst [vmem:[#allocation2 + $0x1] sm:$0xff] %v400_v58  ;;  %v403_v61 = vmax.f32 %v399_v59, 0.0  ;;  %v398_v62 = vadd.f32 %v882_v44, %v387_v60  ;;  %1171 = vmatprep.mubr.f32.mxu1 %v400_v58 }
 0x133   :  { %1172 = vmatmul.mubr.f32.vlgmr.msra.gmra.mxu1 %v401_v54 }
 0x134   :  { %411 = vst [vmem:[#allocation2 + $0x21] sm:$0xff] %v403_v61  ;;  %v402_v0 = vmax.f32 %v398_v62, 0.0  ;;  %1216 = vmatpush3.msra.mxu1 %v643_v26  ;;  %v749_v26 = vld [vmem:[#allocation8 + $0x28] sm:$0xff] }
 0x135   :  { %1217 = vmatprep.subr.mxu1 %v642_v63 }
 0x136   :  { %410 = vst [vmem:[#allocation2 + $0x19] sm:$0xff] %v402_v0  ;;  %1218 = vmatpush3.msra.mxu1 %v642_v63  ;;  %1174 = vmatprep.mubr.f32.mxu1 %v402_v0 }
 0x137   :  { %1219 = vmatprep.subr.mxu1 %v641_v1  ;;  %1175 = vmatmul.mubr.f32.gmra.mxu1 %v403_v61  ;;  %v624_v38 = vld [vmem:[#allocation2 + $0xa] sm:$0xff] }
 0x138   :  { %1220 = vmatpush3.msra.mxu1 %v641_v1 }
 0x139   :  { %v412_v4 = vld [vmem:[#allocation2] sm:$0xff]  ;;  %v413_v5 = vld [vmem:[#allocation2 + $0x8] sm:$0xff]  ;;  %1221 = vmatprep.subr.mxu1 %v640_v2 }
 0x13a   :  { %v623_v6 = vld [vmem:[#allocation2 + $0x2] sm:$0xff]  ;;  %1209 = vmatprep.mubr.f32.mxu0 %v412_v4  ;;  %1222 = vmatpush3.msra.mxu1 %v640_v2 }
 0x13b   :  { %1247 = vmatprep.mubr.f32.mxu1 %v623_v6  ;;  %1210 = vmatmul.mubr.f32.vlgmr.msra.gmra.mxu0 %v413_v5  ;;  %v626_v41 = vld [vmem:[#allocation2 + $0x22] sm:$0xff] }
 0x13c   :  { %1254 = vmatpush3.msra.mxu0 %v1529_v30  ;;  %1223 = vmatprep.subr.mxu1 %v639_v3 }
 0x13d   :  { %v414_v9 = vld [vmem:[#allocation2 + $0x18] sm:$0xff]  ;;  %1255 = vmatprep.subr.mxu0 %v1535_v7  ;;  %v415_v10 = vld [vmem:[#allocation2 + $0x20] sm:$0xff]  ;;  %1224 = vmatpush3.msra.mxu1 %v639_v3 }
 0x13e   :  { %1212 = vmatprep.mubr.f32.mxu0 %v414_v9  ;;  %1256 = vmatpush3.msra.mxu0 %v1535_v7  ;;  %v625_v40 = vld [vmem:[#allocation2 + $0x1a] sm:$0xff] }
 0x13f   :  { %1213 = vmatmul.mubr.f32.gmra.mxu0 %v415_v10  ;;  %1257 = vmatprep.subr.mxu0 %v1538_v8 }
 0x140   :  { %1258 = vmatpush3.msra.mxu0 %v1538_v8  ;;  %1225 = vmatprep.subr.mxu1 %v638_v11 }
 0x141   :  { %1259 = vmatprep.subr.mxu0 %v1542_v12  ;;  %1226 = vmatpush3.msra.mxu1 %v638_v11 }
 0x142   :  { %1260 = vmatpush3.msra.mxu0 %v1542_v12  ;;  %1227 = vmatprep.subr.mxu1 %v637_v13 }
 0x143   :  { %1261 = vmatprep.subr.mxu0 %v1546_v14  ;;  %1228 = vmatpush3.msra.mxu1 %v637_v13 }
 0x144   :  { %1262 = vmatpush3.msra.mxu0 %v1546_v14  ;;  %1229 = vmatprep.subr.mxu1 %v636_v15 }
 0x145   :  { %1263 = vmatprep.subr.mxu0 %v1550_v16  ;;  %1230 = vmatpush3.msra.mxu1 %v636_v15 }
 0x146   :  { %1264 = vmatpush3.msra.mxu0 %v1550_v16  ;;  %1231 = vmatprep.subr.mxu1 %v635_v17 }
 0x147   :  { %1265 = vmatprep.subr.mxu0 %v1554_v18  ;;  %1232 = vmatpush3.msra.mxu1 %v635_v17 }
 0x148   :  { %1266 = vmatpush3.msra.mxu0 %v1554_v18  ;;  %1233 = vmatprep.subr.mxu1 %v634_v19 }
 0x149   :  { %1267 = vmatprep.subr.mxu0 %v1558_v20  ;;  %1234 = vmatpush3.msra.mxu1 %v634_v19 }
 0x14a   :  { %1268 = vmatpush3.msra.mxu0 %v1558_v20  ;;  %1235 = vmatprep.subr.mxu1 %v633_v21 }
 0x14b   :  { %1269 = vmatprep.subr.mxu0 %v1562_v22  ;;  %1236 = vmatpush3.msra.mxu1 %v633_v21 }
 0x14c   :  { %1270 = vmatpush3.msra.mxu0 %v1562_v22  ;;  %1237 = vmatprep.subr.mxu1 %v632_v23 }
 0x14d   :  { %1271 = vmatprep.subr.mxu0 %v1566_v24  ;;  %1238 = vmatpush3.msra.mxu1 %v632_v23 }
 0x14e   :  { %1272 = vmatpush3.msra.mxu0 %v1566_v24  ;;  %1239 = vmatprep.subr.mxu1 %v631_v25 }
 0x14f   :  { %1273 = vmatprep.subr.mxu0 %v749_v26  ;;  %1240 = vmatpush3.msra.mxu1 %v631_v25 }
 0x150   :  { %1274 = vmatpush3.msra.mxu0 %v749_v26  ;;  %1241 = vmatprep.subr.mxu1 %v630_v27 }
 0x151   :  { %1275 = vmatprep.subr.mxu0 %v748_v28  ;;  %1242 = vmatpush3.msra.mxu1 %v630_v27 }
 0x152   :  { %1276 = vmatpush3.msra.mxu0 %v748_v28  ;;  %1243 = vmatprep.subr.mxu1 %v629_v29 }
 0x153   :  { %1277 = vmatprep.subr.mxu0 %v747_v31  ;;  %1244 = vmatpush3.msra.mxu1 %v629_v29 }
 0x154   :  { %1278 = vmatpush3.msra.mxu0 %v747_v31  ;;  %1245 = vmatprep.subr.mxu1 %v628_v33 }
 0x155   :  { %1279 = vmatprep.subr.mxu0 %v746_v35  ;;  %1246 = vmatpush3.msra.mxu1 %v628_v33 }
 0x156   :  { %1280 = vmatpush3.msra.mxu0 %v746_v35  ;;  %1248 = vmatmul.mubr.f32.vlgmr.msra.gmra.mxu1 %v624_v38 }
 0x157   :  { %1281 = vmatprep.subr.mxu0 %v745_v36  ;;  %1291 = vmatprep.subr.mxu1 %v1529_v30 }
 0x158   :  { %1282 = vmatpush3.msra.mxu0 %v745_v36  ;;  %1250 = vmatprep.mubr.f32.mxu1 %v625_v40 }
 0x159   :  { %1283 = vmatprep.subr.mxu0 %v744_v39  ;;  %1307 = vmatpush3.msra.mxu1 %v1529_v30 }
 0x15a   :  { %1284 = vmatpush3.msra.mxu0 %v744_v39  ;;  %1285 = vmatprep.mubr.f32.mxu0 %v1484_v32 }
 0x15b   :  { %1292 = vmatprep.subr.mxu1 %v1535_v7  ;;  %1286 = vmatmul.mubr.f32.vlgmr.msra.gmra.mxu0 %v1492_v34 }
 0x15c   :  { %1308 = vmatpush3.msra.mxu1 %v1535_v7 }
 0x15d   :  { %1251 = vmatmul.mubr.f32.gmra.mxu1 %v626_v41  ;;  %1293 = vmatprep.subr.mxu1 %v1538_v8 }
 0x15e   :  { %1309 = vmatpush3.msra.mxu1 %v1538_v8  ;;  %1288 = vmatprep.mubr.f32.mxu1 %v1501_v37 }
 0x15f   :  { %1294 = vmatprep.subr.mxu1 %v1542_v12 }
 0x160   :  { %1310 = vmatpush3.msra.mxu1 %v1542_v12 }
 0x161   :  { %1295 = vmatprep.subr.mxu1 %v1546_v14 }
 0x162   :  { %1311 = vmatpush3.msra.mxu1 %v1546_v14 }
 0x163   :  { %1296 = vmatprep.subr.mxu1 %v1550_v16 }
 0x164   :  { %1312 = vmatpush3.msra.mxu1 %v1550_v16 }
 0x165   :  { %1297 = vmatprep.subr.mxu1 %v1554_v18 }
 0x166   :  { %1313 = vmatpush3.msra.mxu1 %v1554_v18 }
 0x167   :  { %1298 = vmatprep.subr.mxu1 %v1558_v20 }
 0x168   :  { %1314 = vmatpush3.msra.mxu1 %v1558_v20 }
 0x169   :  { %1299 = vmatprep.subr.mxu1 %v1562_v22 }
 0x16a   :  { %1315 = vmatpush3.msra.mxu1 %v1562_v22 }
 0x16b   :  { %1300 = vmatprep.subr.mxu1 %v1566_v24 }
 0x16c   :  { %1316 = vmatpush3.msra.mxu1 %v1566_v24 }
 0x16d   :  { %1301 = vmatprep.subr.mxu1 %v749_v26 }
 0x16e   :  { %1317 = vmatpush3.msra.mxu1 %v749_v26 }
 0x16f   :  { %1302 = vmatprep.subr.mxu1 %v748_v28 }
 0x170   :  { %1318 = vmatpush3.msra.mxu1 %v748_v28 }
 0x171   :  { %1303 = vmatprep.subr.mxu1 %v747_v31 }
 0x172   :  { %1319 = vmatpush3.msra.mxu1 %v747_v31 }
 0x173   :  { %1304 = vmatprep.subr.mxu1 %v746_v35 }
 0x174   :  { %1320 = vmatpush3.msra.mxu1 %v746_v35 }
 0x175   :  { %1305 = vmatprep.subr.mxu1 %v745_v36 }
 0x176   :  { %1321 = vmatpush3.msra.mxu1 %v745_v36 }
 0x177   :  { %1306 = vmatprep.subr.mxu1 %v744_v39 }
 0x178   :  { %1322 = vmatpush3.msra.mxu1 %v744_v39 }
 0x179   :  { %1289 = vmatmul.mubr.f32.vlgmr.msra.gmra.mxu1 %v1514_v42  ;;  %v884_v42 = vld [vmem:[%s1614_s6] ss:$0 sm:$0xff]  ;;  %s869_s6 = sshll.u32 %s1422_s4, 4  ;;  %s870_s6 = int_to_ptr.vmem [resolvable:$true] %s869_s6 }
 0x17a   :  { %s1390_s19 = scalar_lea.vmem %s870_s6, 512  ;;  %p1395_p2 = scmp.lt.s32.totalorder %s870_s6, %s870_s6 }
 0x17b   :  { %p1391_p1 = scmp.ne.s32.totalorder %s870_s6, %s1390_s19  ;;  %p1396_p3 = scmp.lt.s32.totalorder %s1390_s19, %s1390_s19 }
 0x17d   :  { %p1397_p4 = por %p1396_p3, %p1395_p2 }
 0x17f   :  { %p1398_p5 = pnand %p1397_p4, %p1391_p1 }
 0x1f3   :  { %v1173_v32 = vpop.f32.mrf.mxu1 }
 0x1f5   :  { %v519_v34 = vpop.f32.mrf.mxu1 }
 0x1f7   :  { %v1176_v30 = vpop.f32.mrf.mxu1 }
 0x1f9   :  { %v529_v44 = vpop.f32.mrf.mxu1 }
 0x1fb   :  { %v1211_v37 = vpop.f32.mrf.mxu0 }
 0x1fc   :  { %v610_v46 = vadd.f32 %v1211_v37, %v1173_v32 }
 0x1fd   :  { %v604_v43 = vpop.f32.mrf.mxu0 }
 0x1fe   :  { %v605_v48 = vadd.f32 %v604_v43, %v519_v34 }
 0x1ff   :  { %v1214_v45 = vpop.f32.mrf.mxu0 }
 0x200   :  { %v620_v1 = vadd.f32 %v1214_v45, %v1176_v30 }
 0x201   :  { %v614_v51 = vpop.f32.mrf.mxu0 }
 0x202   :  { %v615_v3 = vadd.f32 %v614_v51, %v529_v44 }
 0x216   :  { %v1249_v47 = vpop.f32.mrf.mxu1 }
 0x217   :  { %v730_v49 = vadd.f32 %v1249_v47, %v610_v46 }
 0x218   :  { %v710_v50 = vpop.f32.mrf.mxu1 }
 0x219   :  { %v729_v53 = vadd.f32 %v710_v50, %v605_v48  ;;  %v741_v55 = vadd.f32 %v883_v52, %v730_v49 }
 0x21b   :  { %v1287_v54 = vpop.f32.mrf.mxu0  ;;  %v740_v58 = vadd.f32 %v883_v52, %v729_v53 }
 0x21c   :  { %v839_v56 = vadd.f32 %v1287_v54, %v884_v42 }
 0x21d   :  { %v833_v57 = vpop.f32.mrf.mxu0  ;;  %v1252_v0 = vpop.f32.mrf.mxu1 }
 0x21e   :  { %v853_v59 = vadd.f32 %v839_v56, %v741_v55  ;;  %v834_v60 = vadd.f32 %v884_v42, %v833_v57  ;;  %v732_v4 = vadd.f32 %v1252_v0, %v620_v1 }
 0x21f   :  { %v720_v2 = vpop.f32.mrf.mxu1 }
 0x220   :  { %v857_v61 = vmax.f32 %v853_v59, 0.0  ;;  %v852_v62 = vadd.f32 %v834_v60, %v740_v58  ;;  %v731_v5 = vadd.f32 %v720_v2, %v615_v3  ;;  %v743_v7 = vadd.f32 %v883_v52, %v732_v4 }
 0x222   :  { %861 = vst [vmem:[#allocation9 + $0x8] sm:$0xff] %v857_v61  ;;  %v856_v63 = vmax.f32 %v852_v62, 0.0  ;;  %v742_v10 = vadd.f32 %v883_v52, %v731_v5 }
 0x224   :  { %860 = vst [vmem:[#allocation9] sm:$0xff] %v856_v63 }
 0x239   :  { %v1290_v6 = vpop.f32.mrf.mxu1 }
 0x23a   :  { %v849_v8 = vadd.f32 %v1290_v6, %v884_v42 }
 0x23b   :  { %v843_v9 = vpop.f32.mrf.mxu1 }
 0x23c   :  { %v855_v11 = vadd.f32 %v849_v8, %v743_v7  ;;  %v844_v12 = vadd.f32 %v884_v42, %v843_v9 }
 0x23e   :  { %v859_v13 = vmax.f32 %v855_v11, 0.0  ;;  %v854_v14 = vadd.f32 %v844_v12, %v742_v10 }
 0x240   :  { %863 = vst [vmem:[#allocation9 + $0x18] sm:$0xff] %v859_v13  ;;  %v858_v15 = vmax.f32 %v854_v14, 0.0 }
 0x242   :  { %862 = vst [vmem:[#allocation9 + $0x10] sm:$0xff] %v858_v15 }
 0x243   :  { %1401 = shalt.err (!%p1398_p5)
}
 0x244   :  { %875 = dma.vmem_to_hbm [thread:$0]  %s870_s6, 512, %s1615_s7, [#allocation5], %s1418_s29, %s1418_s29, %s1419_s30  }
 0x245   :  { %1414 = dma.done.wait [#allocation5], 512  }
 0x246   :  { %1415 = vsyncadd [#allocation5], 4294966784 }
 0x247   :  { %879 = vsyncpa [#allocation4], 1 }
 0x248   :  { %880 = vsyncpa [#allocation7], 1 }
 0x249   :  { %881 = vsyncpa [#allocation5], 1 }

// kernel: tpu_custom_call.1
= control target key start
LH: loop header
LB: loop body
LE: loop exit
PB: predicated region body
PF: predicated region fallthrough
CT: control target
= control target key end

     0   :  { %12 = vsyncpa [#allocation4], 0  ;;  %s1608_s0 = inlined_call_operand.vmem [shape: f32[2,18,128], index: 0, kind: input, shape index: {}]   ;;  %s1609_s1 = inlined_call_operand.hbm [shape: f32[3,128,128], index: 1, kind: input, shape index: {}]   ;;  %s1610_s2 = inlined_call_operand.vmem [shape: f32[1,128], index: 2, kind: input, shape index: {}]   ;;  %s1611_s3 = inlined_call_operand.hbm [shape: f32[3,128,128], index: 3, kind: input, shape index: {}]   ;;  %s1612_s4 = inlined_call_operand.vmem [shape: f32[1,128], index: 4, kind: input, shape index: {}]   ;;  %s1613_s5 = inlined_call_operand.hbm [shape: f32[128,128], index: 5, kind: input, shape index: {}]   ;;  %s1614_s6 = inlined_call_operand.vmem [shape: f32[1,128], index: 6, kind: input, shape index: {}]   ;;  %s1615_s7 = inlined_call_operand.hbm [shape: f32[2,16,128], index: 7, kind: output, shape index: {}]  }
   0x1   :  { %13 = vsyncpa [#allocation7], 0 }
   0x2   :  { %14 = vsyncpa [#allocation5], 0  ;;  %s1416_s24 = smov [#allocation6]   ;;  %s1417_s26 = smov [#allocation3]  }
   0x3   :  { %s36_s25 = sshll.u32 %s1416_s24, 4  ;;  %s22_s27 = sshll.u32 %s1417_s26, 4  ;;  %s37_s25 = int_to_ptr.vmem [resolvable:$true] %s36_s25  ;;  %s23_s27 = int_to_ptr.vmem [resolvable:$true] %s22_s27 }
   0x4   :  { %s1338_s28 = scalar_lea.vmem %s37_s25, 6144  ;;  %p1343_p1 = scmp.lt.s32.totalorder %s37_s25, %s37_s25 }
   0x5   :  { %p1339_p0 = scmp.ne.s32.totalorder %s37_s25, %s1338_s28  ;;  %p1344_p2 = scmp.lt.s32.totalorder %s1338_s28, %s1338_s28 }
   0x7   :  { %p1345_p3 = por %p1344_p2, %p1343_p1 }
   0x9   :  { %p1346_p4 = pnand %p1345_p3, %p1339_p0 }
   0xb   :  { %1349 = shalt.err (!%p1346_p4)
}
   0xc   :  { %s1418_s29 = smov 128   ;;  %s1419_s30 = smov 8  }
   0xd   :  { %42 = dma.hbm_to_vmem [thread:$0]  %s1611_s3, 6144, %s37_s25, [#allocation7], %s1418_s29, %s1418_s29, %s1419_s30  }
   0xe   :  { %s1358_s10 = scalar_lea.vmem %s23_s27, 6144  ;;  %p1363_p6 = scmp.lt.s32.totalorder %s23_s27, %s23_s27 }
   0xf   :  { %p1359_p5 = scmp.ne.s32.totalorder %s23_s27, %s1358_s10  ;;  %p1364_p7 = scmp.lt.s32.totalorder %s1358_s10, %s1358_s10 }
  0x11   :  { %p1365_p8 = por %p1364_p7, %p1363_p6 }
  0x13   :  { %p1366_p9 = pnand %p1365_p8, %p1359_p5 }
  0x15   :  { %1369 = shalt.err (!%p1366_p9)
}
  0x16   :  { %28 = dma.hbm_to_vmem [thread:$0]  %s1609_s1, 6144, %s23_s27, [#allocation4], %s1418_s29, %s1418_s29, %s1419_s30  }
  0x17   :  { %s1420_s13 = smov [#allocation8]  }
  0x18   :  { %s50_s14 = sshll.u32 %s1420_s13, 4  ;;  %s51_s14 = int_to_ptr.vmem [resolvable:$true] %s50_s14 }
  0x19   :  { %s1378_s15 = scalar_lea.vmem %s51_s14, 2048  ;;  %p1383_p11 = scmp.lt.s32.totalorder %s51_s14, %s51_s14 }
  0x1a   :  { %p1379_p10 = scmp.ne.s32.totalorder %s51_s14, %s1378_s15  ;;  %p1384_p12 = scmp.lt.s32.totalorder %s1378_s15, %s1378_s15 }
  0x1c   :  { %p1385_p13 = por %p1384_p12, %p1383_p11 }
  0x1e   :  { %p1386_p0 = pnand %p1385_p13, %p1379_p10 }
  0x20   :  { %1389 = shalt.err (!%p1386_p0)
}
  0x21   :  { %56 = dma.hbm_to_vmem [thread:$0]  %s1613_s5, 2048, %s51_s14, [#allocation7], %s1418_s29, %s1418_s29, %s1419_s30  }
  0x22   :  { %1410 = dma.done.wait [#allocation4], 6144  }
  0x23   :  { %1411 = vsyncadd [#allocation4], 4294961152 }
  0x24   :  { %1412 = dma.done.wait [#allocation7], 8192  }
  0x25   :  { %1413 = vsyncadd [#allocation7], 4294959104  ;;  %v108_v0 = vld [vmem:[#allocation3 + $0xf8] sm:$0xff]  ;;  %v107_v2 = vld [vmem:[#allocation3 + $0xf0] sm:$0xff] }
  0x26   :  { %v91_v1 = vld [vmem:[#allocation3 + $0x78] sm:$0xff]  ;;  %1025 = vmatprep.subr.mxu0 %v108_v0  ;;  %v90_v3 = vld [vmem:[#allocation3 + $0x70] sm:$0xff]  ;;  %v106_v4 = vld [vmem:[#allocation3 + $0xe8] sm:$0xff] }
  0x27   :  { %1063 = vmatprep.subr.mxu1 %v91_v1  ;;  %1026 = vmatpush3.msra.mxu0 %v108_v0  ;;  %v89_v5 = vld [vmem:[#allocation3 + $0x68] sm:$0xff]  ;;  %v105_v6 = vld [vmem:[#allocation3 + $0xe0] sm:$0xff]  ;;  %v104_v8 = vld [vmem:[#allocation3 + $0xd8] sm:$0xff] }
  0x28   :  { %1064 = vmatpush3.msra.mxu1 %v91_v1  ;;  %1027 = vmatprep.subr.mxu0 %v107_v2  ;;  %v88_v7 = vld [vmem:[#allocation3 + $0x60] sm:$0xff]  ;;  %v87_v9 = vld [vmem:[#allocation3 + $0x58] sm:$0xff]  ;;  %v103_v10 = vld [vmem:[#allocation3 + $0xd0] sm:$0xff] }
  0x29   :  { %1065 = vmatprep.subr.mxu1 %v90_v3  ;;  %1028 = vmatpush3.msra.mxu0 %v107_v2  ;;  %v86_v11 = vld [vmem:[#allocation3 + $0x50] sm:$0xff]  ;;  %v102_v12 = vld [vmem:[#allocation3 + $0xc8] sm:$0xff]  ;;  %v101_v14 = vld [vmem:[#allocation3 + $0xc0] sm:$0xff] }
  0x2a   :  { %1066 = vmatpush3.msra.mxu1 %v90_v3  ;;  %1029 = vmatprep.subr.mxu0 %v106_v4  ;;  %v85_v13 = vld [vmem:[#allocation3 + $0x48] sm:$0xff]  ;;  %v84_v15 = vld [vmem:[#allocation3 + $0x40] sm:$0xff]  ;;  %v100_v16 = vld [vmem:[#allocation3 + $0xb8] sm:$0xff] }
  0x2b   :  { %1067 = vmatprep.subr.mxu1 %v89_v5  ;;  %1030 = vmatpush3.msra.mxu0 %v106_v4  ;;  %v83_v17 = vld [vmem:[#allocation3 + $0x38] sm:$0xff]  ;;  %v99_v18 = vld [vmem:[#allocation3 + $0xb0] sm:$0xff]  ;;  %v98_v20 = vld [vmem:[#allocation3 + $0xa8] sm:$0xff] }
  0x2c   :  { %1068 = vmatpush3.msra.mxu1 %v89_v5  ;;  %1031 = vmatprep.subr.mxu0 %v105_v6  ;;  %v82_v19 = vld [vmem:[#allocation3 + $0x30] sm:$0xff]  ;;  %v81_v21 = vld [vmem:[#allocation3 + $0x28] sm:$0xff]  ;;  %v97_v22 = vld [vmem:[#allocation3 + $0xa0] sm:$0xff] }
  0x2d   :  { %1069 = vmatprep.subr.mxu1 %v88_v7  ;;  %1032 = vmatpush3.msra.mxu0 %v105_v6  ;;  %v80_v23 = vld [vmem:[#allocation3 + $0x20] sm:$0xff]  ;;  %v96_v24 = vld [vmem:[#allocation3 + $0x98] sm:$0xff]  ;;  %v95_v26 = vld [vmem:[#allocation3 + $0x90] sm:$0xff] }
  0x2e   :  { %1070 = vmatpush3.msra.mxu1 %v88_v7  ;;  %1033 = vmatprep.subr.mxu0 %v104_v8  ;;  %v79_v25 = vld [vmem:[#allocation3 + $0x18] sm:$0xff]  ;;  %v78_v27 = vld [vmem:[#allocation3 + $0x10] sm:$0xff]  ;;  %v94_v28 = vld [vmem:[#allocation3 + $0x88] sm:$0xff] }
  0x2f   :  { %1071 = vmatprep.subr.mxu1 %v87_v9  ;;  %1034 = vmatpush3.msra.mxu0 %v104_v8  ;;  %v77_v29 = vld [vmem:[#allocation3 + $0x8] sm:$0xff]  ;;  %v93_v30 = vld [vmem:[#allocation3 + $0x80] sm:$0xff]  ;;  %v1484_v32 = vld [vmem:[%s1608_s0 + $0x1] sm:$0xff] }
  0x30   :  { %1072 = vmatpush3.msra.mxu1 %v87_v9  ;;  %1035 = vmatprep.subr.mxu0 %v103_v10  ;;  %v76_v31 = vld [vmem:[#allocation3] sm:$0xff]  ;;  %v72_v33 = vld [vmem:[%s1608_s0] sm:$0xff]  ;;  %v73_v35 = vld [vmem:[%s1608_s0 + $0x8] sm:$0xff] }
  0x31   :  { %1073 = vmatprep.subr.mxu1 %v86_v11  ;;  %1036 = vmatpush3.msra.mxu0 %v103_v10  ;;  %v1492_v34 = vld [vmem:[%s1608_s0 + $0x9] sm:$0xff]  ;;  %v1501_v37 = vld [vmem:[%s1608_s0 + $0x19] sm:$0xff]  ;;  %v1514_v42 = vld [vmem:[%s1608_s0 + $0x21] sm:$0xff] }
  0x32   :  { %1074 = vmatpush3.msra.mxu1 %v86_v11  ;;  %1037 = vmatprep.subr.mxu0 %v102_v12  ;;  %v299_v36 = vld [vmem:[#allocation3 + $0x178] sm:$0xff]  ;;  %v74_v38 = vld [vmem:[%s1608_s0 + $0x18] sm:$0xff]  ;;  %v298_v39 = vld [vmem:[#allocation3 + $0x170] sm:$0xff] }
  0x33   :  { %1075 = vmatprep.subr.mxu1 %v85_v13  ;;  %1038 = vmatpush3.msra.mxu0 %v102_v12  ;;  %v75_v40 = vld [vmem:[%s1608_s0 + $0x20] sm:$0xff]  ;;  %v297_v41 = vld [vmem:[#allocation3 + $0x168] sm:$0xff]  ;;  %v296_v44 = vld [vmem:[#allocation3 + $0x160] sm:$0xff] }
  0x34   :  { %1076 = vmatpush3.msra.mxu1 %v85_v13  ;;  %1039 = vmatprep.subr.mxu0 %v101_v14  ;;  %v279_v43 = vld [vmem:[%s1608_s0 + $0x2] sm:$0xff]  ;;  %v293_v47 = vld [vmem:[#allocation3 + $0x148] sm:$0xff]  ;;  %v292_v48 = vld [vmem:[#allocation3 + $0x140] sm:$0xff] }
  0x35   :  { %1077 = vmatprep.subr.mxu1 %v84_v15  ;;  %1040 = vmatpush3.msra.mxu0 %v101_v14  ;;  %v295_v45 = vld [vmem:[#allocation3 + $0x158] sm:$0xff]  ;;  %v294_v46 = vld [vmem:[#allocation3 + $0x150] sm:$0xff]  ;;  %v289_v51 = vld [vmem:[#allocation3 + $0x128] sm:$0xff] }
  0x36   :  { %1078 = vmatpush3.msra.mxu1 %v84_v15  ;;  %1041 = vmatprep.subr.mxu0 %v100_v16  ;;  %v291_v49 = vld [vmem:[#allocation3 + $0x138] sm:$0xff]  ;;  %v290_v50 = vld [vmem:[#allocation3 + $0x130] sm:$0xff]  ;;  %v288_v52 = vld [vmem:[#allocation3 + $0x120] sm:$0xff] }
  0x37   :  { %1079 = vmatprep.subr.mxu1 %v83_v17  ;;  %1042 = vmatpush3.msra.mxu0 %v100_v16  ;;  %v287_v53 = vld [vmem:[#allocation3 + $0x118] sm:$0xff]  ;;  %v286_v54 = vld [vmem:[#allocation3 + $0x110] sm:$0xff]  ;;  %v285_v55 = vld [vmem:[#allocation3 + $0x108] sm:$0xff] }
  0x38   :  { %1080 = vmatpush3.msra.mxu1 %v83_v17  ;;  %1043 = vmatprep.subr.mxu0 %v99_v18  ;;  %v284_v56 = vld [vmem:[#allocation3 + $0x100] sm:$0xff]  ;;  %v281_v58 = vld [vmem:[%s1608_s0 + $0x1a] sm:$0xff]  ;;  %v282_v59 = vld [vmem:[%s1608_s0 + $0x22] sm:$0xff] }
  0x39   :  { %1081 = vmatprep.subr.mxu1 %v82_v19  ;;  %1044 = vmatpush3.msra.mxu0 %v99_v18  ;;  %v280_v57 = vld [vmem:[%s1608_s0 + $0xa] sm:$0xff]  ;;  %v451_v62 = vld [vmem:[#allocation6 + $0xf0] sm:$0xff]  ;;  %v450_v0 = vld [vmem:[#allocation6 + $0xe8] sm:$0xff] }
  0x3a   :  { %1082 = vmatpush3.msra.mxu1 %v82_v19  ;;  %1045 = vmatprep.subr.mxu0 %v98_v20  ;;  %v452_v60 = vld [vmem:[#allocation6 + $0xf8] sm:$0xff]  ;;  %v430_v63 = vld [vmem:[#allocation6 + $0x70] sm:$0xff]  ;;  %v429_v1 = vld [vmem:[#allocation6 + $0x68] sm:$0xff] }
  0x3b   :  { %1083 = vmatprep.subr.mxu1 %v81_v21  ;;  %1046 = vmatpush3.msra.mxu0 %v98_v20  ;;  %v431_v61 = vld [vmem:[#allocation6 + $0x78] sm:$0xff]  ;;  %v449_v2 = vld [vmem:[#allocation6 + $0xe0] sm:$0xff]  ;;  %v447_v6 = vld [vmem:[#allocation6 + $0xd0] sm:$0xff] }
  0x3c   :  { %1084 = vmatpush3.msra.mxu1 %v81_v21  ;;  %1047 = vmatprep.subr.mxu0 %v97_v22  ;;  %v428_v3 = vld [vmem:[#allocation6 + $0x60] sm:$0xff]  ;;  %v448_v4 = vld [vmem:[#allocation6 + $0xd8] sm:$0xff]  ;;  %v426_v7 = vld [vmem:[#allocation6 + $0x50] sm:$0xff] }
  0x3d   :  { %1085 = vmatprep.subr.mxu1 %v80_v23  ;;  %1048 = vmatpush3.msra.mxu0 %v97_v22  ;;  %v427_v5 = vld [vmem:[#allocation6 + $0x58] sm:$0xff]  ;;  %v446_v8 = vld [vmem:[#allocation6 + $0xc8] sm:$0xff]  ;;  %v445_v10 = vld [vmem:[#allocation6 + $0xc0] sm:$0xff] }
  0x3e   :  { %1086 = vmatpush3.msra.mxu1 %v80_v23  ;;  %1049 = vmatprep.subr.mxu0 %v96_v24  ;;  %v425_v9 = vld [vmem:[#allocation6 + $0x48] sm:$0xff]  ;;  %v444_v11 = vld [vmem:[#allocation6 + $0xb8] sm:$0xff]  ;;  %v443_v12 = vld [vmem:[#allocation6 + $0xb0] sm:$0xff] }
  0x3f   :  { %1087 = vmatprep.subr.mxu1 %v79_v25  ;;  %1050 = vmatpush3.msra.mxu0 %v96_v24  ;;  %v442_v13 = vld [vmem:[#allocation6 + $0xa8] sm:$0xff]  ;;  %v424_v14 = vld [vmem:[#allocation6 + $0x40] sm:$0xff]  ;;  %v423_v16 = vld [vmem:[#allocation6 + $0x38] sm:$0xff]  ;;  %v1421_v24 = vmov 0.0  }
  0x40   :  { %1088 = vmatpush3.msra.mxu1 %v79_v25  ;;  %1051 = vmatprep.subr.mxu0 %v95_v26  ;;  %v441_v15 = vld [vmem:[#allocation6 + $0xa0] sm:$0xff]  ;;  %v440_v17 = vld [vmem:[#allocation6 + $0x98] sm:$0xff]  ;;  %v422_v18 = vld [vmem:[#allocation6 + $0x30] sm:$0xff]  ;;  %404 = vst [vmem:[#allocation2] sm:$0x1] %v1421_v24 }
  0x41   :  { %1089 = vmatprep.subr.mxu1 %v78_v27  ;;  %1052 = vmatpush3.msra.mxu0 %v95_v26  ;;  %v439_v19 = vld [vmem:[#allocation6 + $0x90] sm:$0xff]  ;;  %v421_v20 = vld [vmem:[#allocation6 + $0x28] sm:$0xff]  ;;  %v420_v22 = vld [vmem:[#allocation6 + $0x20] sm:$0xff]  ;;  %405 = vst [vmem:[#allocation2 + $0x18] sm:$0x1] %v1421_v24 }
  0x42   :  { %1090 = vmatpush3.msra.mxu1 %v78_v27  ;;  %1053 = vmatprep.subr.mxu0 %v94_v28  ;;  %v438_v21 = vld [vmem:[#allocation6 + $0x88] sm:$0xff]  ;;  %v437_v23 = vld [vmem:[#allocation6 + $0x80] sm:$0xff]  ;;  %406 = vst [vmem:[#allocation2 + $0x11] sm:$0x1] %v1421_v24  ;;  %407 = vst [vmem:[#allocation2 + $0x29] sm:$0x1] %v1421_v24 }
  0x43   :  { %1091 = vmatprep.subr.mxu1 %v77_v29  ;;  %1054 = vmatpush3.msra.mxu0 %v94_v28  ;;  %v419_v25 = vld [vmem:[#allocation6 + $0x18] sm:$0xff]  ;;  %v418_v27 = vld [vmem:[#allocation6 + $0x10] sm:$0xff]  ;;  %v417_v28 = vld [vmem:[#allocation6 + $0x8] sm:$0xff] }
  0x44   :  { %1092 = vmatpush3.msra.mxu1 %v77_v29  ;;  %1055 = vmatprep.subr.mxu0 %v93_v30  ;;  %v643_v26 = vld [vmem:[#allocation6 + $0x178] sm:$0xff]  ;;  %v416_v29 = vld [vmem:[#allocation6] sm:$0xff]  ;;  %v1566_v24 = vld [vmem:[#allocation8 + $0x30] sm:$0xff] }
  0x45   :  { %1093 = vmatprep.subr.mxu1 %v76_v31  ;;  %1056 = vmatpush3.msra.mxu0 %v93_v30  ;;  %v1529_v30 = vld [vmem:[#allocation8 + $0x78] sm:$0xff] }
  0x46   :  { %1057 = vmatprep.mubr.f32.mxu0 %v1484_v32  ;;  %1094 = vmatpush3.msra.mxu1 %v76_v31 }
  0x47   :  { %1095 = vmatprep.mubr.f32.mxu1 %v72_v33  ;;  %1058 = vmatmul.mubr.f32.vlgmr.msra.gmra.mxu0 %v1492_v34 }
  0x48   :  { %1096 = vmatmul.mubr.f32.vlgmr.msra.gmra.mxu1 %v73_v35  ;;  %1101 = vmatprep.subr.mxu0 %v299_v36 }
  0x49   :  { %1060 = vmatprep.mubr.f32.mxu0 %v1501_v37  ;;  %1102 = vmatpush3.msra.mxu0 %v299_v36 }
  0x4a   :  { %1098 = vmatprep.mubr.f32.mxu1 %v74_v38  ;;  %1103 = vmatprep.subr.mxu0 %v298_v39 }
  0x4b   :  { %1104 = vmatpush3.msra.mxu0 %v298_v39  ;;  %1139 = vmatprep.subr.mxu1 %v452_v60 }
  0x4c   :  { %1099 = vmatmul.mubr.f32.gmra.mxu1 %v75_v40  ;;  %1105 = vmatprep.subr.mxu0 %v297_v41 }
  0x4d   :  { %1061 = vmatmul.mubr.f32.gmra.mxu0 %v1514_v42  ;;  %1140 = vmatpush3.msra.mxu1 %v452_v60 }
  0x4e   :  { %1106 = vmatpush3.msra.mxu0 %v297_v41  ;;  %1133 = vmatprep.mubr.f32.mxu0 %v279_v43 }
  0x4f   :  { %1107 = vmatprep.subr.mxu0 %v296_v44  ;;  %1141 = vmatprep.subr.mxu1 %v451_v62 }
  0x50   :  { %1108 = vmatpush3.msra.mxu0 %v296_v44  ;;  %1142 = vmatpush3.msra.mxu1 %v451_v62  ;;  %v882_v44 = vld [vmem:[%s1610_s2] ss:$0 sm:$0xff] }
  0x51   :  { %1109 = vmatprep.subr.mxu0 %v295_v45  ;;  %1143 = vmatprep.subr.mxu1 %v450_v0 }
  0x52   :  { %1110 = vmatpush3.msra.mxu0 %v295_v45  ;;  %1144 = vmatpush3.msra.mxu1 %v450_v0 }
  0x53   :  { %1111 = vmatprep.subr.mxu0 %v294_v46  ;;  %1145 = vmatprep.subr.mxu1 %v449_v2 }
  0x54   :  { %1112 = vmatpush3.msra.mxu0 %v294_v46  ;;  %1146 = vmatpush3.msra.mxu1 %v449_v2  ;;  %v640_v2 = vld [vmem:[#allocation6 + $0x160] sm:$0xff] }
  0x55   :  { %1113 = vmatprep.subr.mxu0 %v293_v47  ;;  %1147 = vmatprep.subr.mxu1 %v448_v4 }
  0x56   :  { %1114 = vmatpush3.msra.mxu0 %v293_v47  ;;  %1148 = vmatpush3.msra.mxu1 %v448_v4 }
  0x57   :  { %1115 = vmatprep.subr.mxu0 %v292_v48  ;;  %1149 = vmatprep.subr.mxu1 %v447_v6 }
  0x58   :  { %1116 = vmatpush3.msra.mxu0 %v292_v48  ;;  %1150 = vmatpush3.msra.mxu1 %v447_v6 }
  0x59   :  { %1117 = vmatprep.subr.mxu0 %v291_v49  ;;  %1151 = vmatprep.subr.mxu1 %v446_v8 }
  0x5a   :  { %1118 = vmatpush3.msra.mxu0 %v291_v49  ;;  %1152 = vmatpush3.msra.mxu1 %v446_v8  ;;  %v1538_v8 = vld [vmem:[#allocation8 + $0x68] sm:$0xff] }
  0x5b   :  { %1119 = vmatprep.subr.mxu0 %v290_v50  ;;  %1153 = vmatprep.subr.mxu1 %v445_v10 }
  0x5c   :  { %1120 = vmatpush3.msra.mxu0 %v290_v50  ;;  %1154 = vmatpush3.msra.mxu1 %v445_v10 }
  0x5d   :  { %1121 = vmatprep.subr.mxu0 %v289_v51  ;;  %1155 = vmatprep.subr.mxu1 %v444_v11 }
  0x5e   :  { %1122 = vmatpush3.msra.mxu0 %v289_v51  ;;  %1156 = vmatpush3.msra.mxu1 %v444_v11  ;;  %v638_v11 = vld [vmem:[#allocation6 + $0x150] sm:$0xff] }
  0x5f   :  { %1123 = vmatprep.subr.mxu0 %v288_v52  ;;  %1157 = vmatprep.subr.mxu1 %v443_v12 }
  0x60   :  { %1124 = vmatpush3.msra.mxu0 %v288_v52  ;;  %1158 = vmatpush3.msra.mxu1 %v443_v12  ;;  %v1542_v12 = vld [vmem:[#allocation8 + $0x60] sm:$0xff] }
  0x61   :  { %1125 = vmatprep.subr.mxu0 %v287_v53  ;;  %1159 = vmatprep.subr.mxu1 %v442_v13 }
  0x62   :  { %1126 = vmatpush3.msra.mxu0 %v287_v53  ;;  %1160 = vmatpush3.msra.mxu1 %v442_v13  ;;  %v637_v13 = vld [vmem:[#allocation6 + $0x148] sm:$0xff] }
  0x63   :  { %1127 = vmatprep.subr.mxu0 %v286_v54  ;;  %1161 = vmatprep.subr.mxu1 %v441_v15 }
  0x64   :  { %1128 = vmatpush3.msra.mxu0 %v286_v54  ;;  %1162 = vmatpush3.msra.mxu1 %v441_v15  ;;  %v636_v15 = vld [vmem:[#allocation6 + $0x140] sm:$0xff] }
  0x65   :  { %1129 = vmatprep.subr.mxu0 %v285_v55  ;;  %1163 = vmatprep.subr.mxu1 %v440_v17 }
  0x66   :  { %1130 = vmatpush3.msra.mxu0 %v285_v55  ;;  %1164 = vmatpush3.msra.mxu1 %v440_v17  ;;  %v635_v17 = vld [vmem:[#allocation6 + $0x138] sm:$0xff] }
  0x67   :  { %1131 = vmatprep.subr.mxu0 %v284_v56  ;;  %1165 = vmatprep.subr.mxu1 %v439_v19 }
  0x68   :  { %1132 = vmatpush3.msra.mxu0 %v284_v56  ;;  %1166 = vmatpush3.msra.mxu1 %v439_v19  ;;  %v634_v19 = vld [vmem:[#allocation6 + $0x130] sm:$0xff] }
  0x69   :  { %1134 = vmatmul.mubr.f32.vlgmr.msra.gmra.mxu0 %v280_v57  ;;  %1177 = vmatprep.subr.mxu0 %v431_v61 }
  0x6a   :  { %1136 = vmatprep.mubr.f32.mxu0 %v281_v58  ;;  %1178 = vmatpush3.msra.mxu0 %v431_v61 }
  0x6b   :  { %1179 = vmatprep.subr.mxu0 %v430_v63  ;;  %1167 = vmatprep.subr.mxu1 %v438_v21 }
  0x6c   :  { %1180 = vmatpush3.msra.mxu0 %v430_v63  ;;  %1168 = vmatpush3.msra.mxu1 %v438_v21  ;;  %v642_v63 = vld [vmem:[#allocation6 + $0x170] sm:$0xff]  ;;  %v633_v21 = vld [vmem:[#allocation6 + $0x128] sm:$0xff] }
  0x6d   :  { %1137 = vmatmul.mubr.f32.gmra.mxu0 %v282_v59  ;;  %1181 = vmatprep.subr.mxu0 %v429_v1 }
  0x6e   :  { %1182 = vmatpush3.msra.mxu0 %v429_v1  ;;  %1169 = vmatprep.subr.mxu1 %v437_v23  ;;  %v641_v1 = vld [vmem:[#allocation6 + $0x168] sm:$0xff] }
  0x6f   :  { %1183 = vmatprep.subr.mxu0 %v428_v3  ;;  %1170 = vmatpush3.msra.mxu1 %v437_v23  ;;  %v632_v23 = vld [vmem:[#allocation6 + $0x120] sm:$0xff] }
  0x70   :  { %1184 = vmatpush3.msra.mxu0 %v428_v3  ;;  %1215 = vmatprep.subr.mxu1 %v643_v26  ;;  %v639_v3 = vld [vmem:[#allocation6 + $0x158] sm:$0xff] }
  0x71   :  { %1185 = vmatprep.subr.mxu0 %v427_v5 }
  0x72   :  { %1186 = vmatpush3.msra.mxu0 %v427_v5 }
  0x73   :  { %1187 = vmatprep.subr.mxu0 %v426_v7 }
  0x74   :  { %1188 = vmatpush3.msra.mxu0 %v426_v7  ;;  %v1535_v7 = vld [vmem:[#allocation8 + $0x70] sm:$0xff] }
  0x75   :  { %1189 = vmatprep.subr.mxu0 %v425_v9 }
  0x76   :  { %1190 = vmatpush3.msra.mxu0 %v425_v9 }
  0x77   :  { %1191 = vmatprep.subr.mxu0 %v424_v14 }
  0x78   :  { %1192 = vmatpush3.msra.mxu0 %v424_v14  ;;  %v1546_v14 = vld [vmem:[#allocation8 + $0x58] sm:$0xff] }
  0x79   :  { %1193 = vmatprep.subr.mxu0 %v423_v16 }
  0x7a   :  { %1194 = vmatpush3.msra.mxu0 %v423_v16  ;;  %v1550_v16 = vld [vmem:[#allocation8 + $0x50] sm:$0xff] }
  0x7b   :  { %1195 = vmatprep.subr.mxu0 %v422_v18 }
  0x7c   :  { %1196 = vmatpush3.msra.mxu0 %v422_v18  ;;  %v1554_v18 = vld [vmem:[#allocation8 + $0x48] sm:$0xff] }
  0x7d   :  { %1197 = vmatprep.subr.mxu0 %v421_v20 }
  0x7e   :  { %1198 = vmatpush3.msra.mxu0 %v421_v20  ;;  %v1558_v20 = vld [vmem:[#allocation8 + $0x40] sm:$0xff] }
  0x7f   :  { %1199 = vmatprep.subr.mxu0 %v420_v22 }
  0x80   :  { %1200 = vmatpush3.msra.mxu0 %v420_v22  ;;  %v1562_v22 = vld [vmem:[#allocation8 + $0x38] sm:$0xff] }
  0x81   :  { %1201 = vmatprep.subr.mxu0 %v419_v25 }
  0x82   :  { %1202 = vmatpush3.msra.mxu0 %v419_v25  ;;  %v631_v25 = vld [vmem:[#allocation6 + $0x118] sm:$0xff] }
  0x83   :  { %1203 = vmatprep.subr.mxu0 %v418_v27 }
  0x84   :  { %1204 = vmatpush3.msra.mxu0 %v418_v27  ;;  %v630_v27 = vld [vmem:[#allocation6 + $0x110] sm:$0xff] }
  0x85   :  { %1205 = vmatprep.subr.mxu0 %v417_v28 }
  0x86   :  { %1206 = vmatpush3.msra.mxu0 %v417_v28  ;;  %v748_v28 = vld [vmem:[#allocation8 + $0x20] sm:$0xff] }
  0x87   :  { %1207 = vmatprep.subr.mxu0 %v416_v29 }
  0x88   :  { %1208 = vmatpush3.msra.mxu0 %v416_v29  ;;  %v629_v29 = vld [vmem:[#allocation6 + $0x108] sm:$0xff] }
  0x89   :  { %1253 = vmatprep.subr.mxu0 %v1529_v30 }
 0x107   :  { %v1059_v31 = vpop.f32.mrf.mxu0 }
 0x108   :  { %v1097_v33 = vpop.f32.mrf.mxu1 }
 0x109   :  { %v175_v35 = vpop.f32.mrf.mxu0  ;;  %v266_v41 = vadd.f32 %v1097_v33, %v1059_v31  ;;  %v747_v31 = vld [vmem:[#allocation8 + $0x18] sm:$0xff]  ;;  %v628_v33 = vld [vmem:[#allocation6 + $0x100] sm:$0xff] }
 0x10a   :  { %v260_v38 = vpop.f32.mrf.mxu1 }
 0x10b   :  { %v261_v45 = vadd.f32 %v260_v38, %v175_v35  ;;  %v746_v35 = vld [vmem:[#allocation8 + $0x10] sm:$0xff] }
 0x10c   :  { %v1100_v39 = vpop.f32.mrf.mxu1 }
 0x10d   :  { %v1062_v36 = vpop.f32.mrf.mxu0 }
 0x10e   :  { %v270_v47 = vpop.f32.mrf.mxu1  ;;  %v276_v49 = vadd.f32 %v1100_v39, %v1062_v36  ;;  %v745_v36 = vld [vmem:[#allocation8 + $0x8] sm:$0xff]  ;;  %v744_v39 = vld [vmem:[#allocation8] sm:$0xff] }
 0x10f   :  { %v185_v40 = vpop.f32.mrf.mxu0 }
 0x110   :  { %v271_v53 = vadd.f32 %v270_v47, %v185_v40 }
 0x129   :  { %v1135_v43 = vpop.f32.mrf.mxu0 }
 0x12a   :  { %v386_v46 = vadd.f32 %v1135_v43, %v266_v41 }
 0x12b   :  { %v366_v48 = vpop.f32.mrf.mxu0 }
 0x12c   :  { %v397_v50 = vadd.f32 %v882_v44, %v386_v46  ;;  %v385_v51 = vadd.f32 %v366_v48, %v261_v45 }
 0x12d   :  { %v1138_v52 = vpop.f32.mrf.mxu0 }
 0x12e   :  { %v401_v54 = vmax.f32 %v397_v50, 0.0  ;;  %v396_v55 = vadd.f32 %v882_v44, %v385_v51  ;;  %v388_v56 = vadd.f32 %v1138_v52, %v276_v49  ;;  %v883_v52 = vld [vmem:[%s1612_s4] ss:$0 sm:$0xff]  ;;  %s1422_s4 = smov [#allocation9]  }
 0x12f   :  { %v376_v57 = vpop.f32.mrf.mxu0 }
 0x130   :  { %409 = vst [vmem:[#allocation2 + $0x9] sm:$0xff] %v401_v54  ;;  %v400_v58 = vmax.f32 %v396_v55, 0.0  ;;  %v399_v59 = vadd.f32 %v882_v44, %v388_v56  ;;  %v387_v60 = vadd.f32 %v376_v57, %v271_v53 }
 0x132   :  { %408 = vst [vmem:[#allocation2 + $0x1] sm:$0xff] %v400_v58  ;;  %v403_v61 = vmax.f32 %v399_v59, 0.0  ;;  %v398_v62 = vadd.f32 %v882_v44, %v387_v60  ;;  %1171 = vmatprep.mubr.f32.mxu1 %v400_v58 }
 0x133   :  { %1172 = vmatmul.mubr.f32.vlgmr.msra.gmra.mxu1 %v401_v54 }
 0x134   :  { %411 = vst [vmem:[#allocation2 + $0x21] sm:$0xff] %v403_v61  ;;  %v402_v0 = vmax.f32 %v398_v62, 0.0  ;;  %1216 = vmatpush3.msra.mxu1 %v643_v26  ;;  %v749_v26 = vld [vmem:[#allocation8 + $0x28] sm:$0xff] }
 0x135   :  { %1217 = vmatprep.subr.mxu1 %v642_v63 }
 0x136   :  { %410 = vst [vmem:[#allocation2 + $0x19] sm:$0xff] %v402_v0  ;;  %1218 = vmatpush3.msra.mxu1 %v642_v63  ;;  %1174 = vmatprep.mubr.f32.mxu1 %v402_v0 }
 0x137   :  { %1219 = vmatprep.subr.mxu1 %v641_v1  ;;  %1175 = vmatmul.mubr.f32.gmra.mxu1 %v403_v61  ;;  %v624_v38 = vld [vmem:[#allocation2 + $0xa] sm:$0xff] }
 0x138   :  { %1220 = vmatpush3.msra.mxu1 %v641_v1 }
 0x139   :  { %v412_v4 = vld [vmem:[#allocation2] sm:$0xff]  ;;  %v413_v5 = vld [vmem:[#allocation2 + $0x8] sm:$0xff]  ;;  %1221 = vmatprep.subr.mxu1 %v640_v2 }
 0x13a   :  { %v623_v6 = vld [vmem:[#allocation2 + $0x2] sm:$0xff]  ;;  %1209 = vmatprep.mubr.f32.mxu0 %v412_v4  ;;  %1222 = vmatpush3.msra.mxu1 %v640_v2 }
 0x13b   :  { %1247 = vmatprep.mubr.f32.mxu1 %v623_v6  ;;  %1210 = vmatmul.mubr.f32.vlgmr.msra.gmra.mxu0 %v413_v5  ;;  %v626_v41 = vld [vmem:[#allocation2 + $0x22] sm:$0xff] }
 0x13c   :  { %1254 = vmatpush3.msra.mxu0 %v1529_v30  ;;  %1223 = vmatprep.subr.mxu1 %v639_v3 }
 0x13d   :  { %v414_v9 = vld [vmem:[#allocation2 + $0x18] sm:$0xff]  ;;  %1255 = vmatprep.subr.mxu0 %v1535_v7  ;;  %v415_v10 = vld [vmem:[#allocation2 + $0x20] sm:$0xff]  ;;  %1224 = vmatpush3.msra.mxu1 %v639_v3 }
 0x13e   :  { %1212 = vmatprep.mubr.f32.mxu0 %v414_v9  ;;  %1256 = vmatpush3.msra.mxu0 %v1535_v7  ;;  %v625_v40 = vld [vmem:[#allocation2 + $0x1a] sm:$0xff] }
 0x13f   :  { %1213 = vmatmul.mubr.f32.gmra.mxu0 %v415_v10  ;;  %1257 = vmatprep.subr.mxu0 %v1538_v8 }
 0x140   :  { %1258 = vmatpush3.msra.mxu0 %v1538_v8  ;;  %1225 = vmatprep.subr.mxu1 %v638_v11 }
 0x141   :  { %1259 = vmatprep.subr.mxu0 %v1542_v12  ;;  %1226 = vmatpush3.msra.mxu1 %v638_v11 }
 0x142   :  { %1260 = vmatpush3.msra.mxu0 %v1542_v12  ;;  %1227 = vmatprep.subr.mxu1 %v637_v13 }
 0x143   :  { %1261 = vmatprep.subr.mxu0 %v1546_v14  ;;  %1228 = vmatpush3.msra.mxu1 %v637_v13 }
 0x144   :  { %1262 = vmatpush3.msra.mxu0 %v1546_v14  ;;  %1229 = vmatprep.subr.mxu1 %v636_v15 }
 0x145   :  { %1263 = vmatprep.subr.mxu0 %v1550_v16  ;;  %1230 = vmatpush3.msra.mxu1 %v636_v15 }
 0x146   :  { %1264 = vmatpush3.msra.mxu0 %v1550_v16  ;;  %1231 = vmatprep.subr.mxu1 %v635_v17 }
 0x147   :  { %1265 = vmatprep.subr.mxu0 %v1554_v18  ;;  %1232 = vmatpush3.msra.mxu1 %v635_v17 }
 0x148   :  { %1266 = vmatpush3.msra.mxu0 %v1554_v18  ;;  %1233 = vmatprep.subr.mxu1 %v634_v19 }
 0x149   :  { %1267 = vmatprep.subr.mxu0 %v1558_v20  ;;  %1234 = vmatpush3.msra.mxu1 %v634_v19 }
 0x14a   :  { %1268 = vmatpush3.msra.mxu0 %v1558_v20  ;;  %1235 = vmatprep.subr.mxu1 %v633_v21 }
 0x14b   :  { %1269 = vmatprep.subr.mxu0 %v1562_v22  ;;  %1236 = vmatpush3.msra.mxu1 %v633_v21 }
 0x14c   :  { %1270 = vmatpush3.msra.mxu0 %v1562_v22  ;;  %1237 = vmatprep.subr.mxu1 %v632_v23 }
 0x14d   :  { %1271 = vmatprep.subr.mxu0 %v1566_v24  ;;  %1238 = vmatpush3.msra.mxu1 %v632_v23 }
 0x14e   :  { %1272 = vmatpush3.msra.mxu0 %v1566_v24  ;;  %1239 = vmatprep.subr.mxu1 %v631_v25 }
 0x14f   :  { %1273 = vmatprep.subr.mxu0 %v749_v26  ;;  %1240 = vmatpush3.msra.mxu1 %v631_v25 }
 0x150   :  { %1274 = vmatpush3.msra.mxu0 %v749_v26  ;;  %1241 = vmatprep.subr.mxu1 %v630_v27 }
 0x151   :  { %1275 = vmatprep.subr.mxu0 %v748_v28  ;;  %1242 = vmatpush3.msra.mxu1 %v630_v27 }
 0x152   :  { %1276 = vmatpush3.msra.mxu0 %v748_v28  ;;  %1243 = vmatprep.subr.mxu1 %v629_v29 }
 0x153   :  { %1277 = vmatprep.subr.mxu0 %v747_v31  ;;  %1244 = vmatpush3.msra.mxu1 %v629_v29 }
 0x154   :  { %1278 = vmatpush3.msra.mxu0 %v747_v31  ;;  %1245 = vmatprep.subr.mxu1 %v628_v33 }
 0x155   :  { %1279 = vmatprep.subr.mxu0 %v746_v35  ;;  %1246 = vmatpush3.msra.mxu1 %v628_v33 }
 0x156   :  { %1280 = vmatpush3.msra.mxu0 %v746_v35  ;;  %1248 = vmatmul.mubr.f32.vlgmr.msra.gmra.mxu1 %v624_v38 }
 0x157   :  { %1281 = vmatprep.subr.mxu0 %v745_v36  ;;  %1291 = vmatprep.subr.mxu1 %v1529_v30 }
 0x158   :  { %1282 = vmatpush3.msra.mxu0 %v745_v36  ;;  %1250 = vmatprep.mubr.f32.mxu1 %v625_v40 }
 0x159   :  { %1283 = vmatprep.subr.mxu0 %v744_v39  ;;  %1307 = vmatpush3.msra.mxu1 %v1529_v30 }
 0x15a   :  { %1284 = vmatpush3.msra.mxu0 %v744_v39  ;;  %1285 = vmatprep.mubr.f32.mxu0 %v1484_v32 }
 0x15b   :  { %1292 = vmatprep.subr.mxu1 %v1535_v7  ;;  %1286 = vmatmul.mubr.f32.vlgmr.msra.gmra.mxu0 %v1492_v34 }
 0x15c   :  { %1308 = vmatpush3.msra.mxu1 %v1535_v7 }
 0x15d   :  { %1251 = vmatmul.mubr.f32.gmra.mxu1 %v626_v41  ;;  %1293 = vmatprep.subr.mxu1 %v1538_v8 }
 0x15e   :  { %1309 = vmatpush3.msra.mxu1 %v1538_v8  ;;  %1288 = vmatprep.mubr.f32.mxu1 %v1501_v37 }
 0x15f   :  { %1294 = vmatprep.subr.mxu1 %v1542_v12 }
 0x160   :  { %1310 = vmatpush3.msra.mxu1 %v1542_v12 }
 0x161   :  { %1295 = vmatprep.subr.mxu1 %v1546_v14 }
 0x162   :  { %1311 = vmatpush3.msra.mxu1 %v1546_v14 }
 0x163   :  { %1296 = vmatprep.subr.mxu1 %v1550_v16 }
 0x164   :  { %1312 = vmatpush3.msra.mxu1 %v1550_v16 }
 0x165   :  { %1297 = vmatprep.subr.mxu1 %v1554_v18 }
 0x166   :  { %1313 = vmatpush3.msra.mxu1 %v1554_v18 }
 0x167   :  { %1298 = vmatprep.subr.mxu1 %v1558_v20 }
 0x168   :  { %1314 = vmatpush3.msra.mxu1 %v1558_v20 }
 0x169   :  { %1299 = vmatprep.subr.mxu1 %v1562_v22 }
 0x16a   :  { %1315 = vmatpush3.msra.mxu1 %v1562_v22 }
 0x16b   :  { %1300 = vmatprep.subr.mxu1 %v1566_v24 }
 0x16c   :  { %1316 = vmatpush3.msra.mxu1 %v1566_v24 }
 0x16d   :  { %1301 = vmatprep.subr.mxu1 %v749_v26 }
 0x16e   :  { %1317 = vmatpush3.msra.mxu1 %v749_v26 }
 0x16f   :  { %1302 = vmatprep.subr.mxu1 %v748_v28 }
 0x170   :  { %1318 = vmatpush3.msra.mxu1 %v748_v28 }
 0x171   :  { %1303 = vmatprep.subr.mxu1 %v747_v31 }
 0x172   :  { %1319 = vmatpush3.msra.mxu1 %v747_v31 }
 0x173   :  { %1304 = vmatprep.subr.mxu1 %v746_v35 }
 0x174   :  { %1320 = vmatpush3.msra.mxu1 %v746_v35 }
 0x175   :  { %1305 = vmatprep.subr.mxu1 %v745_v36 }
 0x176   :  { %1321 = vmatpush3.msra.mxu1 %v745_v36 }
 0x177   :  { %1306 = vmatprep.subr.mxu1 %v744_v39 }
 0x178   :  { %1322 = vmatpush3.msra.mxu1 %v744_v39 }
 0x179   :  { %1289 = vmatmul.mubr.f32.vlgmr.msra.gmra.mxu1 %v1514_v42  ;;  %v884_v42 = vld [vmem:[%s1614_s6] ss:$0 sm:$0xff]  ;;  %s869_s6 = sshll.u32 %s1422_s4, 4  ;;  %s870_s6 = int_to_ptr.vmem [resolvable:$true] %s869_s6 }
 0x17a   :  { %s1390_s19 = scalar_lea.vmem %s870_s6, 512  ;;  %p1395_p2 = scmp.lt.s32.totalorder %s870_s6, %s870_s6 }
 0x17b   :  { %p1391_p1 = scmp.ne.s32.totalorder %s870_s6, %s1390_s19  ;;  %p1396_p3 = scmp.lt.s32.totalorder %s1390_s19, %s1390_s19 }
 0x17d   :  { %p1397_p4 = por %p1396_p3, %p1395_p2 }
 0x17f   :  { %p1398_p5 = pnand %p1397_p4, %p1391_p1 }
 0x1f3   :  { %v1173_v32 = vpop.f32.mrf.mxu1 }
 0x1f5   :  { %v519_v34 = vpop.f32.mrf.mxu1 }
 0x1f7   :  { %v1176_v30 = vpop.f32.mrf.mxu1 }
 0x1f9   :  { %v529_v44 = vpop.f32.mrf.mxu1 }
 0x1fb   :  { %v1211_v37 = vpop.f32.mrf.mxu0 }
 0x1fc   :  { %v610_v46 = vadd.f32 %v1211_v37, %v1173_v32 }
 0x1fd   :  { %v604_v43 = vpop.f32.mrf.mxu0 }
 0x1fe   :  { %v605_v48 = vadd.f32 %v604_v43, %v519_v34 }
 0x1ff   :  { %v1214_v45 = vpop.f32.mrf.mxu0 }
 0x200   :  { %v620_v1 = vadd.f32 %v1214_v45, %v1176_v30 }
 0x201   :  { %v614_v51 = vpop.f32.mrf.mxu0 }
 0x202   :  { %v615_v3 = vadd.f32 %v614_v51, %v529_v44 }
 0x216   :  { %v1249_v47 = vpop.f32.mrf.mxu1 }
 0x217   :  { %v730_v49 = vadd.f32 %v1249_v47, %v610_v46 }
 0x218   :  { %v710_v50 = vpop.f32.mrf.mxu1 }
 0x219   :  { %v729_v53 = vadd.f32 %v710_v50, %v605_v48  ;;  %v741_v55 = vadd.f32 %v883_v52, %v730_v49 }
 0x21b   :  { %v1287_v54 = vpop.f32.mrf.mxu0  ;;  %v740_v58 = vadd.f32 %v883_v52, %v729_v53 }
 0x21c   :  { %v839_v56 = vadd.f32 %v1287_v54, %v884_v42 }
 0x21d   :  { %v833_v57 = vpop.f32.mrf.mxu0  ;;  %v1252_v0 = vpop.f32.mrf.mxu1 }
 0x21e   :  { %v853_v59 = vadd.f32 %v839_v56, %v741_v55  ;;  %v834_v60 = vadd.f32 %v884_v42, %v833_v57  ;;  %v732_v4 = vadd.f32 %v1252_v0, %v620_v1 }
 0x21f   :  { %v720_v2 = vpop.f32.mrf.mxu1 }
 0x220   :  { %v857_v61 = vmax.f32 %v853_v59, 0.0  ;;  %v852_v62 = vadd.f32 %v834_v60, %v740_v58  ;;  %v731_v5 = vadd.f32 %v720_v2, %v615_v3  ;;  %v743_v7 = vadd.f32 %v883_v52, %v732_v4 }
 0x222   :  { %861 = vst [vmem:[#allocation9 + $0x8] sm:$0xff] %v857_v61  ;;  %v856_v63 = vmax.f32 %v852_v62, 0.0  ;;  %v742_v10 = vadd.f32 %v883_v52, %v731_v5 }
 0x224   :  { %860 = vst [vmem:[#allocation9] sm:$0xff] %v856_v63 }
 0x239   :  { %v1290_v6 = vpop.f32.mrf.mxu1 }
 0x23a   :  { %v849_v8 = vadd.f32 %v1290_v6, %v884_v42 }
 0x23b   :  { %v843_v9 = vpop.f32.mrf.mxu1 }
 0x23c   :  { %v855_v11 = vadd.f32 %v849_v8, %v743_v7  ;;  %v844_v12 = vadd.f32 %v884_v42, %v843_v9 }
 0x23e   :  { %v859_v13 = vmax.f32 %v855_v11, 0.0  ;;  %v854_v14 = vadd.f32 %v844_v12, %v742_v10 }
 0x240   :  { %863 = vst [vmem:[#allocation9 + $0x18] sm:$0xff] %v859_v13  ;;  %v858_v15 = vmax.f32 %v854_v14, 0.0 }
 0x242   :  { %862 = vst [vmem:[#allocation9 + $0x10] sm:$0xff] %v858_v15 }
 0x243   :  { %1401 = shalt.err (!%p1398_p5)
}
 0x244   :  { %875 = dma.vmem_to_hbm [thread:$0]  %s870_s6, 512, %s1615_s7, [#allocation5], %s1418_s29, %s1418_s29, %s1419_s30  }
 0x245   :  { %1414 = dma.done.wait [#allocation5], 512  }
 0x246   :  { %1415 = vsyncadd [#allocation5], 4294966784 }
 0x247   :  { %879 = vsyncpa [#allocation4], 1 }
 0x248   :  { %880 = vsyncpa [#allocation7], 1 }
 0x249   :  { %881 = vsyncpa [#allocation5], 1 }

</bundles_post_ra>
